<compile_context>
chip_gen: v7x
topology: tpu7x:2x2x1
jax: 0.10.0
libtpu: 0.0.40
codegen_flags: <defaults>
</compile_context>

<pallas_src>
import math

import numpy as np
import jax
import jax.numpy as jnp
from jax import lax
from jax.experimental import pallas as pl
from jax.experimental.pallas import tpu as pltpu


# ----------------------------------------------------------------------------
# sincos 2D positional embedding (verbatim numpy port of the reference code)
# ----------------------------------------------------------------------------
def get_1d_sincos_pos_embed_from_grid(embed_dim, pos):
    assert embed_dim % 2 == 0
    omega = np.arange(embed_dim // 2, dtype=np.float32)
    omega /= embed_dim / 2.0
    omega = 1.0 / 10000 ** omega
    pos = pos.reshape(-1)
    out = np.einsum('m,d->md', pos, omega)
    return np.concatenate([np.sin(out), np.cos(out)], axis=1)


def get_2d_sincos_pos_embed_from_grid(embed_dim, grid):
    assert embed_dim % 2 == 0
    emb_h = get_1d_sincos_pos_embed_from_grid(embed_dim // 2, grid[0])
    emb_w = get_1d_sincos_pos_embed_from_grid(embed_dim // 2, grid[1])
    return np.concatenate([emb_h, emb_w], axis=1)


def get_2d_sincos_pos_embed(embed_dim, grid_size):
    grid_h = np.arange(grid_size, dtype=np.float32)
    grid_w = np.arange(grid_size, dtype=np.float32)
    grid = np.meshgrid(grid_w, grid_h)
    grid = np.stack(grid, axis=0).reshape([2, 1, grid_size, grid_size])
    return get_2d_sincos_pos_embed_from_grid(embed_dim, grid)


# ----------------------------------------------------------------------------
# LayerNorm helper (used both in-kernel and in the hoisted query path)
# ----------------------------------------------------------------------------
def _layernorm(x, w, b, eps=1e-5):
    mean = jnp.mean(x, axis=-1, keepdims=True)
    var = jnp.mean((x - mean) ** 2, axis=-1, keepdims=True)
    return (x - mean) * lax.rsqrt(var + eps) * w + b


# ----------------------------------------------------------------------------
# Pallas kernel
# ----------------------------------------------------------------------------
def resampler_kernel(
    x_ref,        # (Bt, N, KV)   bf16
    posk_ref,     # (N,  D)       f32   pos embed added to keys
    wkv_ref,      # (KV, D)       bf16  kv_proj weight, (in, out)
    lnkvw_ref,    # (1,  D)       f32
    lnkvb_ref,    # (1,  D)       f32
    qh_ref,       # (H, nq, hd)   bf16  pre-projected, pre-scaled queries per head
    wk_ref,       # (D,  D)       bf16  fused K in_proj weight, (in, out)
    bk_ref,       # (1,  D)       f32
    wv_ref,       # (D,  D)       bf16  fused V in_proj weight, (in, out)
    bv_ref,       # (1,  D)       f32
    wo_ref,       # (H, hd, D)    bf16  out_proj weight split along its input (head) dim
    bo_ref,       # (1,  D)       f32
    out_ref,      # (Bt, nq, D)   f32
    attn_ref,     # (Bt, nq, N)   f32   head-averaged attention weights
):
    Bt, N, KV = x_ref.shape
    H, nq, hd = qh_ref.shape
    D = H * hd
    M = Bt * N
    f32 = jnp.float32
    bf16 = jnp.bfloat16

    # ---- kv_proj (no bias) + ln_kv over all Bt*N rows in one MXU matmul ----
    x_flat = x_ref[...].reshape(M, KV)                                   # leading-dim merge
    xk = jnp.dot(x_flat, wkv_ref[...], preferred_element_type=f32)       # (M, D)
    xk = _layernorm(xk, lnkvw_ref[...], lnkvb_ref[...])

    key_in = (xk.reshape(Bt, N, D) + posk_ref[...][None]).reshape(M, D)  # keys get pos
    value_in = xk                                                        # values do not

    # ---- fused K / V projections: lane-dense (M, D) x (D, D), full MXU N fill ----
    kh = jnp.dot(key_in.astype(bf16), wk_ref[...],
                 preferred_element_type=f32) + bk_ref[...]               # (M, D) f32
    vh = jnp.dot(value_in.astype(bf16), wv_ref[...],
                 preferred_element_type=f32) + bv_ref[...]               # (M, D) f32
    kh = kh.astype(bf16).reshape(Bt, N, D)
    vh = vh.astype(bf16).reshape(Bt, N, D)

    # ---- per-head attention with accumulated out_proj and head-mean attn ----
    # Only one (Bt, nq, N) score/prob tensor is live per head; no (H, M, D)
    # intermediates. Head slices are 128-aligned (free) whenever hd % 128 == 0.
    out_acc = jnp.zeros((Bt * nq, D), f32)
    attn_acc = jnp.zeros((Bt, nq, N), f32)
    inv_h = 1.0 / H
    for h in range(H):                                   # static unroll (H small here)
        lo = h * hd
        k_h = kh[:, :, lo:lo + hd]                       # (Bt, N, hd) bf16
        v_h = vh[:, :, lo:lo + hd]                       # (Bt, N, hd) bf16
        q_h = jnp.broadcast_to(qh_ref[h][None], (Bt, nq, hd))            # bf16, tiny

        s = jnp.einsum('bqe,bke->bqk', q_h, k_h,
                       preferred_element_type=f32)       # (Bt, nq, N)
        s = s - jnp.max(s, axis=-1, keepdims=True)
        e = jnp.exp(s)
        p = e / jnp.sum(e, axis=-1, keepdims=True)       # exact softmax (attn is returned)
        attn_acc = attn_acc + p * inv_h

        o_h = jnp.einsum('bqk,bke->bqe', p.astype(bf16), v_h,
                         preferred_element_type=f32)     # (Bt, nq, hd)
        out_acc = out_acc + jnp.dot(o_h.astype(bf16).reshape(Bt * nq, hd),
                                    wo_ref[h], preferred_element_type=f32)

    out_ref[...] = (out_acc + bo_ref[...]).reshape(Bt, nq, D).astype(out_ref.dtype)
    attn_ref[...] = attn_acc.astype(attn_ref.dtype)


# ----------------------------------------------------------------------------
# Host-side prep: weight re-layout (once) + hoisted batch-invariant query path
# ----------------------------------------------------------------------------
def prepare_inputs(x, params, *, num_heads):
    B, N, KV = x.shape
    nq, D = params["query"].shape
    H = num_heads
    assert D % H == 0
    hd = D // H
    scale = 1.0 / math.sqrt(hd)
    f32, bf16 = jnp.float32, jnp.bfloat16

    # Hoisted query path: ln_q -> + pos_q -> Q projection -> 1/sqrt(hd) -> head split.
    qn = _layernorm(params["query"].astype(f32),
                    params["ln_q_w"].reshape(1, D).astype(f32),
                    params["ln_q_b"].reshape(1, D).astype(f32))
    query_in = qn + params["pos_q"].astype(f32)
    q_proj = (query_in @ params["w_q"].T.astype(f32)
              + params["b_q"].reshape(1, D).astype(f32)) * scale         # (nq, D)
    q_heads = jnp.transpose(q_proj.reshape(nq, H, hd), (1, 0, 2)).astype(bf16)

    inputs = dict(
        x=x.astype(bf16),
        pos_k=params["pos_k"].astype(f32),
        w_kv=params["w_kv"].T.astype(bf16),                              # (KV, D)
        ln_kv_w=params["ln_kv_w"].reshape(1, D).astype(f32),
        ln_kv_b=params["ln_kv_b"].reshape(1, D).astype(f32),
        q_heads=q_heads,                                                 # (H, nq, hd)
        w_k=params["w_k"].T.astype(bf16),                                # (D, D) in->out
        b_k=params["b_k"].reshape(1, D).astype(f32),
        w_v=params["w_v"].T.astype(bf16),
        b_v=params["b_v"].reshape(1, D).astype(f32),
        w_o=params["w_o"].T.reshape(H, hd, D).astype(bf16),              # per-head rows
        b_o=params["b_o"].reshape(1, D).astype(f32),
    )
    return inputs, (H, hd)


def _choose_block_b(B, N, KV, nq, D, budget_bytes):
    """Largest batch fold Bt whose per-step working set fits the VMEM budget,
    preferring a grid length >= 2 (keeps both v7x TensorCores busy)."""
    def est(bt):
        m = bt * N
        b = 2 * bt * N * KV * 2            # x block, double-buffered, bf16
        b += 3 * m * D * 4                 # xk / key_in / value_in f32
        b += 2 * m * D * (4 + 2)           # kh, vh (f32 result + bf16 copy)
        b += 2 * bt * nq * N * 4           # per-head scores / probs f32
        b += bt * nq * (D + N) * 4         # out / attn accumulators
        b += 2 * bt * nq * (D + N) * 4     # outputs, double-buffered
        return b
    divisors = [d for d in range(1, B + 1) if B % d == 0]
    feasible = [d for d in divisors if est(d) <= budget_bytes] or [1]
    preferred = [d for d in feasible if B // d >= 2] or feasible
    return max(preferred)


# ----------------------------------------------------------------------------
# Wrapper
# ----------------------------------------------------------------------------
def resampler_forward(x, params, *, num_heads, block_b=None,
                      vmem_budget_bytes=40 * 2**20):
    B, N, KV = x.shape
    nq, D = params["query"].shape
    inputs, (H, hd) = prepare_inputs(x, params, num_heads=num_heads)

    if block_b is None:
        block_b = _choose_block_b(B, N, KV, nq, D, vmem_budget_bytes)
    Bt = block_b
    assert B % Bt == 0
    grid = (B // Bt,)

    def inv(shape):
        # Grid-invariant operand: constant index map + single buffering
        # (the block never changes, so the second pipeline buffer is pure waste).
        zeros = (0,) * len(shape)
        return pl.BlockSpec(shape, lambda b, _z=zeros: _z,
                            pipeline_mode=pl.Buffered(1))

    in_specs = [
        pl.BlockSpec((Bt, N, KV), lambda b: (b, 0, 0)),   # x
        inv((N, D)),                                      # pos_k
        inv((KV, D)),                                     # w_kv
        inv((1, D)), inv((1, D)),                         # ln_kv w, b
        inv((H, nq, hd)),                                 # q_heads (pre-projected)
        inv((D, D)), inv((1, D)),                         # w_k, b_k (fused)
        inv((D, D)), inv((1, D)),                         # w_v, b_v (fused)
        inv((H, hd, D)), inv((1, D)),                     # w_o (per head), b_o
    ]
    out_specs = [
        pl.BlockSpec((Bt, nq, D), lambda b: (b, 0, 0)),
        pl.BlockSpec((Bt, nq, N), lambda b: (b, 0, 0)),
    ]
    out_shape = [
        jax.ShapeDtypeStruct((B, nq, D), jnp.float32),
        jax.ShapeDtypeStruct((B, nq, N), jnp.float32),
    ]

    # TODO(synk): at production D (>= 4096) the fused (D, D) weights should be tiled
    # over an extra "arbitrary" grid axis (heads / D chunks) with a VMEM accumulator,
    # so total weight residency fits v7x's 64 MiB VMEM.
    f = pl.pallas_call(
        resampler_kernel,
        grid=grid,
        in_specs=in_specs,
        out_specs=out_specs,
        out_shape=out_shape,
        compiler_params=pltpu.CompilerParams(
            dimension_semantics=("parallel",),
            vmem_limit_bytes=48 * 2**20),
    )
    return f(inputs["x"], inputs["pos_k"], inputs["w_kv"],
             inputs["ln_kv_w"], inputs["ln_kv_b"], inputs["q_heads"],
             inputs["w_k"], inputs["b_k"], inputs["w_v"], inputs["b_v"],
             inputs["w_o"], inputs["b_o"])


# ----------------------------------------------------------------------------
# Pure-JAX reference (mirrors the PyTorch module) + parameter construction
# ----------------------------------------------------------------------------
def resampler_reference(x, params, *, num_heads):
    B, N, KV = x.shape
    nq, D = params["query"].shape
    H = num_heads
    hd = D // H
    scale = 1.0 / math.sqrt(hd)
    f32 = jnp.float32
    ln = lambda v, w, b: _layernorm(v.astype(f32), w.reshape(1, D).astype(f32),
                                    b.reshape(1, D).astype(f32))

    xk = jnp.einsum('bnk,dk->bnd', x.astype(f32), params["w_kv"].astype(f32))
    xk = ln(xk, params["ln_kv_w"], params["ln_kv_b"])
    q = ln(params["query"], params["ln_q_w"], params["ln_q_b"]) + params["pos_q"].astype(f32)
    k_in = xk + params["pos_k"].astype(f32)[None]
    v_in = xk

    qp = (q @ params["w_q"].T.astype(f32) + params["b_q"].reshape(1, D)) * scale
    kp = jnp.einsum('bnd,ed->bne', k_in, params["w_k"].astype(f32)) + params["b_k"].reshape(1, D)
    vp = jnp.einsum('bnd,ed->bne', v_in, params["w_v"].astype(f32)) + params["b_v"].reshape(1, D)

    qh = qp.reshape(nq, H, hd)
    kh = kp.reshape(B, N, H, hd)
    vh = vp.reshape(B, N, H, hd)
    s = jnp.einsum('qhe,bnhe->bhqn', qh, kh)
    p = jax.nn.softmax(s, axis=-1)
    o = jnp.einsum('bhqn,bnhe->bqhe', p, vh).reshape(B, nq, D)
    out = o @ params["w_o"].T.astype(f32) + params["b_o"].reshape(1, D)
    attn = jnp.mean(p, axis=1)
    return out, attn


def make_params(key, *, grid_size, embed_dim, kv_dim):
    nq = grid_size ** 2
    D = embed_dim
    ks = jax.random.split(key, 8)
    pos = jnp.asarray(get_2d_sincos_pos_embed(D, grid_size), jnp.float32)   # (nq, D)

    in_proj_w = jax.random.normal(ks[1], (3 * D, D), jnp.float32) * 0.02
    in_proj_b = jax.random.normal(ks[4], (3, 1, D), jnp.float32) * 0.02
    return {
        "query": jax.random.normal(ks[0], (nq, D), jnp.float32) * 0.02,
        "pos_q": pos,
        # TODO(synk): bicubic interpolation of pos_embed (get_abs_pos) when the
        # source grid != target grid is not implemented; here N == grid_size**2 so
        # the identity path of get_abs_pos is exact.
        "pos_k": pos,
        "w_kv": jax.random.normal(ks[2], (D, kv_dim), jnp.float32) * 0.02,   # torch (out, in)
        "ln_q_w": jnp.ones((1, D), jnp.float32),
        "ln_q_b": jnp.zeros((1, D), jnp.float32),
        "ln_kv_w": jnp.ones((1, D), jnp.float32),
        "ln_kv_b": jnp.zeros((1, D), jnp.float32),
        "w_q": in_proj_w[0 * D:1 * D],
        "w_k": in_proj_w[1 * D:2 * D],
        "w_v": in_proj_w[2 * D:3 * D],
        "b_q": in_proj_b[0],
        "b_k": in_proj_b[1],
        "b_v": in_proj_b[2],
        "w_o": jax.random.normal(ks[3], (D, D), jnp.float32) * 0.02,         # torch (out, in)
        "b_o": jax.random.normal(ks[5], (1, D), jnp.float32) * 0.02,
    }


if __name__ == "__main__":
    # Small config: grid_size=4 -> 16 queries, embed_dim=32, 4 heads, kv_dim=24.
    grid_size, embed_dim, num_heads, kv_dim = 4, 32, 4, 24
    B = 2
    N = grid_size ** 2  # keeps get_abs_pos on its identity path

    key = jax.random.PRNGKey(0)
    kx, kp = jax.random.split(key)
    x = jax.random.normal(kx, (B, N, kv_dim), jnp.float32)
    params = make_params(kp, grid_size=grid_size, embed_dim=embed_dim, kv_dim=kv_dim)

    out, attn = resampler_forward(x, params, num_heads=num_heads)
    jax.block_until_ready((out, attn))

    assert out.shape == (B, grid_size ** 2, embed_dim)
    assert attn.shape == (B, grid_size ** 2, N)
    assert bool(jnp.all(jnp.isfinite(out))) and bool(jnp.all(jnp.isfinite(attn)))

    # Loose correctness check against a pure-JAX f32 reference (kernel uses bf16 matmuls).
    ref_out, ref_attn = resampler_reference(x, params, num_heads=num_heads)
    jax.block_until_ready((ref_out, ref_attn))
    err_out = float(jnp.max(jnp.abs(out - ref_out)))
    err_attn = float(jnp.max(jnp.abs(attn - ref_attn)))
    assert err_out < 2e-2 and err_attn < 2e-2, (err_out, err_attn)

    print("KERNEL_OK")
</pallas_src>

<mosaic_0001>
module attributes {stable_mosaic.version = 11 : i64} {
  func.func @resampler_kernel(%arg0: i32, %arg1: memref<1x16x24xbf16, #tpu.memory_space<vmem>>, %arg2: memref<16x32xf32, #tpu.memory_space<vmem>>, %arg3: memref<24x32xbf16, #tpu.memory_space<vmem>>, %arg4: memref<1x32xf32, #tpu.memory_space<vmem>>, %arg5: memref<1x32xf32, #tpu.memory_space<vmem>>, %arg6: memref<4x16x8xbf16, #tpu.memory_space<vmem>>, %arg7: memref<32x32xbf16, #tpu.memory_space<vmem>>, %arg8: memref<1x32xf32, #tpu.memory_space<vmem>>, %arg9: memref<32x32xbf16, #tpu.memory_space<vmem>>, %arg10: memref<1x32xf32, #tpu.memory_space<vmem>>, %arg11: memref<4x8x32xbf16, #tpu.memory_space<vmem>>, %arg12: memref<1x32xf32, #tpu.memory_space<vmem>>, %arg13: memref<1x16x32xf32, #tpu.memory_space<vmem>>, %arg14: memref<1x16x16xf32, #tpu.memory_space<vmem>>) attributes {dimension_semantics = [#tpu.dimension_semantics<parallel>], iteration_bounds = array<i64: 2>, scalar_prefetch = 0 : i64, scratch_operands = 0 : i64, tpu.core_type = #tpu.core_type<tc>, window_params = [{transform_indices = @transform_0, window_bounds = array<i64: 1, 16, 24>}, {pipeline_mode = #tpu.pipeline_mode<synchronous>, transform_indices = @transform_1, window_bounds = array<i64: 16, 32>}, {pipeline_mode = #tpu.pipeline_mode<synchronous>, transform_indices = @transform_2, window_bounds = array<i64: 24, 32>}, {pipeline_mode = #tpu.pipeline_mode<synchronous>, transform_indices = @transform_3, window_bounds = array<i64: 1, 32>}, {pipeline_mode = #tpu.pipeline_mode<synchronous>, transform_indices = @transform_4, window_bounds = array<i64: 1, 32>}, {pipeline_mode = #tpu.pipeline_mode<synchronous>, transform_indices = @transform_5, window_bounds = array<i64: 4, 16, 8>}, {pipeline_mode = #tpu.pipeline_mode<synchronous>, transform_indices = @transform_6, window_bounds = array<i64: 32, 32>}, {pipeline_mode = #tpu.pipeline_mode<synchronous>, transform_indices = @transform_7, window_bounds = array<i64: 1, 32>}, {pipeline_mode = #tpu.pipeline_mode<synchronous>, transform_indices = @transform_8, window_bounds = array<i64: 32, 32>}, {pipeline_mode = #tpu.pipeline_mode<synchronous>, transform_indices = @transform_9, window_bounds = array<i64: 1, 32>}, {pipeline_mode = #tpu.pipeline_mode<synchronous>, transform_indices = @transform_10, window_bounds = array<i64: 4, 8, 32>}, {pipeline_mode = #tpu.pipeline_mode<synchronous>, transform_indices = @transform_11, window_bounds = array<i64: 1, 32>}, {transform_indices = @transform_12, window_bounds = array<i64: 1, 16, 32>}, {transform_indices = @transform_13, window_bounds = array<i64: 1, 16, 16>}]} {
    %c0 = arith.constant 0 : index
    %c0_0 = arith.constant 0 : index
    %c0_1 = arith.constant 0 : index
    %0 = vector.load %arg1[%c0, %c0_0, %c0_1] : memref<1x16x24xbf16, #tpu.memory_space<vmem>>, vector<1x16x24xbf16>
    %1 = vector.shape_cast %0 : vector<1x16x24xbf16> to vector<16x24xbf16>
    %c0_2 = arith.constant 0 : index
    %c0_3 = arith.constant 0 : index
    %2 = vector.load %arg3[%c0_2, %c0_3] : memref<24x32xbf16, #tpu.memory_space<vmem>>, vector<24x32xbf16>
    %cst = arith.constant dense<0.000000e+00> : vector<16x32xf32>
    %3 = tpu.matmul %1, %2, %cst {dimension_numbers = #tpu.dot_dimension_numbers<[1], [0], [0], [1], [0, 0, 1, 1], [], []>} : vector<16x24xbf16>, vector<24x32xbf16>, vector<16x32xf32> -> vector<16x32xf32>
    %c0_4 = arith.constant 0 : index
    %c0_5 = arith.constant 0 : index
    %4 = vector.load %arg4[%c0_4, %c0_5] : memref<1x32xf32, #tpu.memory_space<vmem>>, vector<1x32xf32>
    %c0_6 = arith.constant 0 : index
    %c0_7 = arith.constant 0 : index
    %5 = vector.load %arg5[%c0_6, %c0_7] : memref<1x32xf32, #tpu.memory_space<vmem>>, vector<1x32xf32>
    %cst_8 = arith.constant dense<0.000000e+00> : vector<16xf32>
    %6 = vector.multi_reduction <add>, %3, %cst_8 [1] : vector<16x32xf32> to vector<16xf32>
    %7 = vector.shape_cast %6 : vector<16xf32> to vector<16x1xf32>
    %cst_9 = arith.constant 3.200000e+01 : f32
    %8 = vector.broadcast %cst_9 : f32 to vector<16x1xf32>
    %9 = arith.divf %7, %8 : vector<16x1xf32>
    %10 = vector.broadcast %9 : vector<16x1xf32> to vector<16x32xf32>
    %11 = arith.subf %3, %10 : vector<16x32xf32>
    %12 = arith.mulf %11, %11 : vector<16x32xf32>
    %cst_10 = arith.constant dense<0.000000e+00> : vector<16xf32>
    %13 = vector.multi_reduction <add>, %12, %cst_10 [1] : vector<16x32xf32> to vector<16xf32>
    %14 = vector.shape_cast %13 : vector<16xf32> to vector<16x1xf32>
    %cst_11 = arith.constant 3.200000e+01 : f32
    %15 = vector.broadcast %cst_11 : f32 to vector<16x1xf32>
    %16 = arith.divf %14, %15 : vector<16x1xf32>
    %17 = vector.broadcast %9 : vector<16x1xf32> to vector<16x32xf32>
    %18 = arith.subf %3, %17 : vector<16x32xf32>
    %cst_12 = arith.constant 9.99999974E-6 : f32
    %19 = vector.broadcast %cst_12 : f32 to vector<16x1xf32>
    %20 = arith.addf %16, %19 : vector<16x1xf32>
    %21 = math.rsqrt %20 : vector<16x1xf32>
    %22 = vector.broadcast %21 : vector<16x1xf32> to vector<16x32xf32>
    %23 = arith.mulf %18, %22 : vector<16x32xf32>
    %24 = vector.broadcast %4 : vector<1x32xf32> to vector<16x32xf32>
    %25 = arith.mulf %23, %24 : vector<16x32xf32>
    %26 = vector.broadcast %5 : vector<1x32xf32> to vector<16x32xf32>
    %27 = arith.addf %25, %26 : vector<16x32xf32>
    %28 = vector.shape_cast %27 : vector<16x32xf32> to vector<1x16x32xf32>
    %c0_13 = arith.constant 0 : index
    %c0_14 = arith.constant 0 : index
    %29 = vector.load %arg2[%c0_13, %c0_14] : memref<16x32xf32, #tpu.memory_space<vmem>>, vector<16x32xf32>
    %30 = vector.shape_cast %29 : vector<16x32xf32> to vector<1x16x32xf32>
    %31 = arith.addf %28, %30 : vector<1x16x32xf32>
    %32 = vector.shape_cast %31 : vector<1x16x32xf32> to vector<16x32xf32>
    %33 = arith.truncf %32 : vector<16x32xf32> to vector<16x32xbf16>
    %c0_15 = arith.constant 0 : index
    %c0_16 = arith.constant 0 : index
    %34 = vector.load %arg7[%c0_15, %c0_16] : memref<32x32xbf16, #tpu.memory_space<vmem>>, vector<32x32xbf16>
    %cst_17 = arith.constant dense<0.000000e+00> : vector<16x32xf32>
    %35 = tpu.matmul %33, %34, %cst_17 {dimension_numbers = #tpu.dot_dimension_numbers<[1], [0], [0], [1], [0, 0, 1, 1], [], []>} : vector<16x32xbf16>, vector<32x32xbf16>, vector<16x32xf32> -> vector<16x32xf32>
    %c0_18 = arith.constant 0 : index
    %c0_19 = arith.constant 0 : index
    %36 = vector.load %arg8[%c0_18, %c0_19] : memref<1x32xf32, #tpu.memory_space<vmem>>, vector<1x32xf32>
    %37 = vector.broadcast %36 : vector<1x32xf32> to vector<16x32xf32>
    %38 = arith.addf %35, %37 : vector<16x32xf32>
    %39 = arith.truncf %27 : vector<16x32xf32> to vector<16x32xbf16>
    %c0_20 = arith.constant 0 : index
    %c0_21 = arith.constant 0 : index
    %40 = vector.load %arg9[%c0_20, %c0_21] : memref<32x32xbf16, #tpu.memory_space<vmem>>, vector<32x32xbf16>
    %cst_22 = arith.constant dense<0.000000e+00> : vector<16x32xf32>
    %41 = tpu.matmul %39, %40, %cst_22 {dimension_numbers = #tpu.dot_dimension_numbers<[1], [0], [0], [1], [0, 0, 1, 1], [], []>} : vector<16x32xbf16>, vector<32x32xbf16>, vector<16x32xf32> -> vector<16x32xf32>
    %c0_23 = arith.constant 0 : index
    %c0_24 = arith.constant 0 : index
    %42 = vector.load %arg10[%c0_23, %c0_24] : memref<1x32xf32, #tpu.memory_space<vmem>>, vector<1x32xf32>
    %43 = vector.broadcast %42 : vector<1x32xf32> to vector<16x32xf32>
    %44 = arith.addf %41, %43 : vector<16x32xf32>
    %45 = arith.truncf %38 : vector<16x32xf32> to vector<16x32xbf16>
    %46 = vector.shape_cast %45 : vector<16x32xbf16> to vector<1x16x32xbf16>
    %47 = arith.truncf %44 : vector<16x32xf32> to vector<16x32xbf16>
    %48 = vector.shape_cast %47 : vector<16x32xbf16> to vector<1x16x32xbf16>
    %cst_25 = arith.constant 0.000000e+00 : f32
    %49 = vector.broadcast %cst_25 : f32 to vector<16x32xf32>
    %cst_26 = arith.constant 0.000000e+00 : f32
    %50 = vector.broadcast %cst_26 : f32 to vector<1x16x16xf32>
    %51 = vector.extract_strided_slice %46 {offsets = [0, 0, 0], sizes = [1, 16, 8], strides = [1, 1, 1]} : vector<1x16x32xbf16> to vector<1x16x8xbf16>
    %52 = vector.extract_strided_slice %48 {offsets = [0, 0, 0], sizes = [1, 16, 8], strides = [1, 1, 1]} : vector<1x16x32xbf16> to vector<1x16x8xbf16>
    %c0_27 = arith.constant 0 : index
    %c0_28 = arith.constant 0 : index
    %c0_29 = arith.constant 0 : index
    %53 = vector.load %arg6[%c0_27, %c0_28, %c0_29] : memref<4x16x8xbf16, #tpu.memory_space<vmem>>, vector<1x16x8xbf16>
    %54 = vector.shape_cast %53 : vector<1x16x8xbf16> to vector<16x8xbf16>
    %55 = vector.shape_cast %54 : vector<16x8xbf16> to vector<1x16x8xbf16>
    "tpu.trace_start"() <{level = 10 : i32, message = "bqe,bke->bqk"}> : () -> ()
    %cst_30 = arith.constant dense<0.000000e+00> : vector<1x16x16xf32>
    %56 = tpu.matmul %55, %51, %cst_30 {dimension_numbers = #tpu.dot_dimension_numbers<[2], [2], [1], [1], [0, 0, 0, 1, 1, 1], [0], [0]>} : vector<1x16x8xbf16>, vector<1x16x8xbf16>, vector<1x16x16xf32> -> vector<1x16x16xf32>
    "tpu.trace_stop"() : () -> ()
    %cst_31 = arith.constant dense<0xFF800000> : vector<1x16xf32>
    %57 = vector.multi_reduction <maximumf>, %56, %cst_31 [2] : vector<1x16x16xf32> to vector<1x16xf32>
    %58 = vector.shape_cast %57 : vector<1x16xf32> to vector<1x16x1xf32>
    %59 = vector.broadcast %58 : vector<1x16x1xf32> to vector<1x16x16xf32>
    %60 = arith.subf %56, %59 : vector<1x16x16xf32>
    %61 = math.exp %60 : vector<1x16x16xf32>
    %cst_32 = arith.constant dense<0.000000e+00> : vector<1x16xf32>
    %62 = vector.multi_reduction <add>, %61, %cst_32 [2] : vector<1x16x16xf32> to vector<1x16xf32>
    %63 = vector.shape_cast %62 : vector<1x16xf32> to vector<1x16x1xf32>
    %64 = vector.broadcast %63 : vector<1x16x1xf32> to vector<1x16x16xf32>
    %65 = arith.divf %61, %64 : vector<1x16x16xf32>
    %cst_33 = arith.constant 2.500000e-01 : f32
    %66 = vector.broadcast %cst_33 : f32 to vector<1x16x16xf32>
    %67 = arith.mulf %65, %66 : vector<1x16x16xf32>
    %68 = arith.addf %50, %67 : vector<1x16x16xf32>
    %69 = arith.truncf %65 : vector<1x16x16xf32> to vector<1x16x16xbf16>
    "tpu.trace_start"() <{level = 10 : i32, message = "bqk,bke->bqe"}> : () -> ()
    %cst_34 = arith.constant dense<0.000000e+00> : vector<1x16x8xf32>
    %70 = tpu.matmul %69, %52, %cst_34 {dimension_numbers = #tpu.dot_dimension_numbers<[2], [1], [1], [2], [0, 0, 0, 1, 1, 2], [0], [0]>} : vector<1x16x16xbf16>, vector<1x16x8xbf16>, vector<1x16x8xf32> -> vector<1x16x8xf32>
    "tpu.trace_stop"() : () -> ()
    %71 = arith.truncf %70 : vector<1x16x8xf32> to vector<1x16x8xbf16>
    %72 = vector.shape_cast %71 : vector<1x16x8xbf16> to vector<16x8xbf16>
    %c0_35 = arith.constant 0 : index
    %c0_36 = arith.constant 0 : index
    %c0_37 = arith.constant 0 : index
    %73 = vector.load %arg11[%c0_35, %c0_36, %c0_37] : memref<4x8x32xbf16, #tpu.memory_space<vmem>>, vector<1x8x32xbf16>
    %74 = vector.shape_cast %73 : vector<1x8x32xbf16> to vector<8x32xbf16>
    %cst_38 = arith.constant dense<0.000000e+00> : vector<16x32xf32>
    %75 = tpu.matmul %72, %74, %cst_38 {dimension_numbers = #tpu.dot_dimension_numbers<[1], [0], [0], [1], [0, 0, 1, 1], [], []>} : vector<16x8xbf16>, vector<8x32xbf16>, vector<16x32xf32> -> vector<16x32xf32>
    %76 = arith.addf %49, %75 : vector<16x32xf32>
    %77 = vector.extract_strided_slice %46 {offsets = [0, 0, 8], sizes = [1, 16, 8], strides = [1, 1, 1]} : vector<1x16x32xbf16> to vector<1x16x8xbf16>
    %78 = vector.extract_strided_slice %48 {offsets = [0, 0, 8], sizes = [1, 16, 8], strides = [1, 1, 1]} : vector<1x16x32xbf16> to vector<1x16x8xbf16>
    %c1 = arith.constant 1 : index
    %c0_39 = arith.constant 0 : index
    %c0_40 = arith.constant 0 : index
    %79 = vector.load %arg6[%c1, %c0_39, %c0_40] : memref<4x16x8xbf16, #tpu.memory_space<vmem>>, vector<1x16x8xbf16>
    %80 = vector.shape_cast %79 : vector<1x16x8xbf16> to vector<16x8xbf16>
    %81 = vector.shape_cast %80 : vector<16x8xbf16> to vector<1x16x8xbf16>
    "tpu.trace_start"() <{level = 10 : i32, message = "bqe,bke->bqk"}> : () -> ()
    %cst_41 = arith.constant dense<0.000000e+00> : vector<1x16x16xf32>
    %82 = tpu.matmul %81, %77, %cst_41 {dimension_numbers = #tpu.dot_dimension_numbers<[2], [2], [1], [1], [0, 0, 0, 1, 1, 1], [0], [0]>} : vector<1x16x8xbf16>, vector<1x16x8xbf16>, vector<1x16x16xf32> -> vector<1x16x16xf32>
    "tpu.trace_stop"() : () -> ()
    %cst_42 = arith.constant dense<0xFF800000> : vector<1x16xf32>
    %83 = vector.multi_reduction <maximumf>, %82, %cst_42 [2] : vector<1x16x16xf32> to vector<1x16xf32>
    %84 = vector.shape_cast %83 : vector<1x16xf32> to vector<1x16x1xf32>
    %85 = vector.broadcast %84 : vector<1x16x1xf32> to vector<1x16x16xf32>
    %86 = arith.subf %82, %85 : vector<1x16x16xf32>
    %87 = math.exp %86 : vector<1x16x16xf32>
    %cst_43 = arith.constant dense<0.000000e+00> : vector<1x16xf32>
    %88 = vector.multi_reduction <add>, %87, %cst_43 [2] : vector<1x16x16xf32> to vector<1x16xf32>
    %89 = vector.shape_cast %88 : vector<1x16xf32> to vector<1x16x1xf32>
    %90 = vector.broadcast %89 : vector<1x16x1xf32> to vector<1x16x16xf32>
    %91 = arith.divf %87, %90 : vector<1x16x16xf32>
    %cst_44 = arith.constant 2.500000e-01 : f32
    %92 = vector.broadcast %cst_44 : f32 to vector<1x16x16xf32>
    %93 = arith.mulf %91, %92 : vector<1x16x16xf32>
    %94 = arith.addf %68, %93 : vector<1x16x16xf32>
    %95 = arith.truncf %91 : vector<1x16x16xf32> to vector<1x16x16xbf16>
    "tpu.trace_start"() <{level = 10 : i32, message = "bqk,bke->bqe"}> : () -> ()
    %cst_45 = arith.constant dense<0.000000e+00> : vector<1x16x8xf32>
    %96 = tpu.matmul %95, %78, %cst_45 {dimension_numbers = #tpu.dot_dimension_numbers<[2], [1], [1], [2], [0, 0, 0, 1, 1, 2], [0], [0]>} : vector<1x16x16xbf16>, vector<1x16x8xbf16>, vector<1x16x8xf32> -> vector<1x16x8xf32>
    "tpu.trace_stop"() : () -> ()
    %97 = arith.truncf %96 : vector<1x16x8xf32> to vector<1x16x8xbf16>
    %98 = vector.shape_cast %97 : vector<1x16x8xbf16> to vector<16x8xbf16>
    %c1_46 = arith.constant 1 : index
    %c0_47 = arith.constant 0 : index
    %c0_48 = arith.constant 0 : index
    %99 = vector.load %arg11[%c1_46, %c0_47, %c0_48] : memref<4x8x32xbf16, #tpu.memory_space<vmem>>, vector<1x8x32xbf16>
    %100 = vector.shape_cast %99 : vector<1x8x32xbf16> to vector<8x32xbf16>
    %cst_49 = arith.constant dense<0.000000e+00> : vector<16x32xf32>
    %101 = tpu.matmul %98, %100, %cst_49 {dimension_numbers = #tpu.dot_dimension_numbers<[1], [0], [0], [1], [0, 0, 1, 1], [], []>} : vector<16x8xbf16>, vector<8x32xbf16>, vector<16x32xf32> -> vector<16x32xf32>
    %102 = arith.addf %76, %101 : vector<16x32xf32>
    %103 = vector.extract_strided_slice %46 {offsets = [0, 0, 16], sizes = [1, 16, 8], strides = [1, 1, 1]} : vector<1x16x32xbf16> to vector<1x16x8xbf16>
    %104 = vector.extract_strided_slice %48 {offsets = [0, 0, 16], sizes = [1, 16, 8], strides = [1, 1, 1]} : vector<1x16x32xbf16> to vector<1x16x8xbf16>
    %c2 = arith.constant 2 : index
    %c0_50 = arith.constant 0 : index
    %c0_51 = arith.constant 0 : index
    %105 = vector.load %arg6[%c2, %c0_50, %c0_51] : memref<4x16x8xbf16, #tpu.memory_space<vmem>>, vector<1x16x8xbf16>
    %106 = vector.shape_cast %105 : vector<1x16x8xbf16> to vector<16x8xbf16>
    %107 = vector.shape_cast %106 : vector<16x8xbf16> to vector<1x16x8xbf16>
    "tpu.trace_start"() <{level = 10 : i32, message = "bqe,bke->bqk"}> : () -> ()
    %cst_52 = arith.constant dense<0.000000e+00> : vector<1x16x16xf32>
    %108 = tpu.matmul %107, %103, %cst_52 {dimension_numbers = #tpu.dot_dimension_numbers<[2], [2], [1], [1], [0, 0, 0, 1, 1, 1], [0], [0]>} : vector<1x16x8xbf16>, vector<1x16x8xbf16>, vector<1x16x16xf32> -> vector<1x16x16xf32>
    "tpu.trace_stop"() : () -> ()
    %cst_53 = arith.constant dense<0xFF800000> : vector<1x16xf32>
    %109 = vector.multi_reduction <maximumf>, %108, %cst_53 [2] : vector<1x16x16xf32> to vector<1x16xf32>
    %110 = vector.shape_cast %109 : vector<1x16xf32> to vector<1x16x1xf32>
    %111 = vector.broadcast %110 : vector<1x16x1xf32> to vector<1x16x16xf32>
    %112 = arith.subf %108, %111 : vector<1x16x16xf32>
    %113 = math.exp %112 : vector<1x16x16xf32>
    %cst_54 = arith.constant dense<0.000000e+00> : vector<1x16xf32>
    %114 = vector.multi_reduction <add>, %113, %cst_54 [2] : vector<1x16x16xf32> to vector<1x16xf32>
    %115 = vector.shape_cast %114 : vector<1x16xf32> to vector<1x16x1xf32>
    %116 = vector.broadcast %115 : vector<1x16x1xf32> to vector<1x16x16xf32>
    %117 = arith.divf %113, %116 : vector<1x16x16xf32>
    %cst_55 = arith.constant 2.500000e-01 : f32
    %118 = vector.broadcast %cst_55 : f32 to vector<1x16x16xf32>
    %119 = arith.mulf %117, %118 : vector<1x16x16xf32>
    %120 = arith.addf %94, %119 : vector<1x16x16xf32>
    %121 = arith.truncf %117 : vector<1x16x16xf32> to vector<1x16x16xbf16>
    "tpu.trace_start"() <{level = 10 : i32, message = "bqk,bke->bqe"}> : () -> ()
    %cst_56 = arith.constant dense<0.000000e+00> : vector<1x16x8xf32>
    %122 = tpu.matmul %121, %104, %cst_56 {dimension_numbers = #tpu.dot_dimension_numbers<[2], [1], [1], [2], [0, 0, 0, 1, 1, 2], [0], [0]>} : vector<1x16x16xbf16>, vector<1x16x8xbf16>, vector<1x16x8xf32> -> vector<1x16x8xf32>
    "tpu.trace_stop"() : () -> ()
    %123 = arith.truncf %122 : vector<1x16x8xf32> to vector<1x16x8xbf16>
    %124 = vector.shape_cast %123 : vector<1x16x8xbf16> to vector<16x8xbf16>
    %c2_57 = arith.constant 2 : index
    %c0_58 = arith.constant 0 : index
    %c0_59 = arith.constant 0 : index
    %125 = vector.load %arg11[%c2_57, %c0_58, %c0_59] : memref<4x8x32xbf16, #tpu.memory_space<vmem>>, vector<1x8x32xbf16>
    %126 = vector.shape_cast %125 : vector<1x8x32xbf16> to vector<8x32xbf16>
    %cst_60 = arith.constant dense<0.000000e+00> : vector<16x32xf32>
    %127 = tpu.matmul %124, %126, %cst_60 {dimension_numbers = #tpu.dot_dimension_numbers<[1], [0], [0], [1], [0, 0, 1, 1], [], []>} : vector<16x8xbf16>, vector<8x32xbf16>, vector<16x32xf32> -> vector<16x32xf32>
    %128 = arith.addf %102, %127 : vector<16x32xf32>
    %129 = vector.extract_strided_slice %46 {offsets = [0, 0, 24], sizes = [1, 16, 8], strides = [1, 1, 1]} : vector<1x16x32xbf16> to vector<1x16x8xbf16>
    %130 = vector.extract_strided_slice %48 {offsets = [0, 0, 24], sizes = [1, 16, 8], strides = [1, 1, 1]} : vector<1x16x32xbf16> to vector<1x16x8xbf16>
    %c3 = arith.constant 3 : index
    %c0_61 = arith.constant 0 : index
    %c0_62 = arith.constant 0 : index
    %131 = vector.load %arg6[%c3, %c0_61, %c0_62] : memref<4x16x8xbf16, #tpu.memory_space<vmem>>, vector<1x16x8xbf16>
    %132 = vector.shape_cast %131 : vector<1x16x8xbf16> to vector<16x8xbf16>
    %133 = vector.shape_cast %132 : vector<16x8xbf16> to vector<1x16x8xbf16>
    "tpu.trace_start"() <{level = 10 : i32, message = "bqe,bke->bqk"}> : () -> ()
    %cst_63 = arith.constant dense<0.000000e+00> : vector<1x16x16xf32>
    %134 = tpu.matmul %133, %129, %cst_63 {dimension_numbers = #tpu.dot_dimension_numbers<[2], [2], [1], [1], [0, 0, 0, 1, 1, 1], [0], [0]>} : vector<1x16x8xbf16>, vector<1x16x8xbf16>, vector<1x16x16xf32> -> vector<1x16x16xf32>
    "tpu.trace_stop"() : () -> ()
    %cst_64 = arith.constant dense<0xFF800000> : vector<1x16xf32>
    %135 = vector.multi_reduction <maximumf>, %134, %cst_64 [2] : vector<1x16x16xf32> to vector<1x16xf32>
    %136 = vector.shape_cast %135 : vector<1x16xf32> to vector<1x16x1xf32>
    %137 = vector.broadcast %136 : vector<1x16x1xf32> to vector<1x16x16xf32>
    %138 = arith.subf %134, %137 : vector<1x16x16xf32>
    %139 = math.exp %138 : vector<1x16x16xf32>
    %cst_65 = arith.constant dense<0.000000e+00> : vector<1x16xf32>
    %140 = vector.multi_reduction <add>, %139, %cst_65 [2] : vector<1x16x16xf32> to vector<1x16xf32>
    %141 = vector.shape_cast %140 : vector<1x16xf32> to vector<1x16x1xf32>
    %142 = vector.broadcast %141 : vector<1x16x1xf32> to vector<1x16x16xf32>
    %143 = arith.divf %139, %142 : vector<1x16x16xf32>
    %cst_66 = arith.constant 2.500000e-01 : f32
    %144 = vector.broadcast %cst_66 : f32 to vector<1x16x16xf32>
    %145 = arith.mulf %143, %144 : vector<1x16x16xf32>
    %146 = arith.addf %120, %145 : vector<1x16x16xf32>
    %147 = arith.truncf %143 : vector<1x16x16xf32> to vector<1x16x16xbf16>
    "tpu.trace_start"() <{level = 10 : i32, message = "bqk,bke->bqe"}> : () -> ()
    %cst_67 = arith.constant dense<0.000000e+00> : vector<1x16x8xf32>
    %148 = tpu.matmul %147, %130, %cst_67 {dimension_numbers = #tpu.dot_dimension_numbers<[2], [1], [1], [2], [0, 0, 0, 1, 1, 2], [0], [0]>} : vector<1x16x16xbf16>, vector<1x16x8xbf16>, vector<1x16x8xf32> -> vector<1x16x8xf32>
    "tpu.trace_stop"() : () -> ()
    %149 = arith.truncf %148 : vector<1x16x8xf32> to vector<1x16x8xbf16>
    %150 = vector.shape_cast %149 : vector<1x16x8xbf16> to vector<16x8xbf16>
    %c3_68 = arith.constant 3 : index
    %c0_69 = arith.constant 0 : index
    %c0_70 = arith.constant 0 : index
    %151 = vector.load %arg11[%c3_68, %c0_69, %c0_70] : memref<4x8x32xbf16, #tpu.memory_space<vmem>>, vector<1x8x32xbf16>
    %152 = vector.shape_cast %151 : vector<1x8x32xbf16> to vector<8x32xbf16>
    %cst_71 = arith.constant dense<0.000000e+00> : vector<16x32xf32>
    %153 = tpu.matmul %150, %152, %cst_71 {dimension_numbers = #tpu.dot_dimension_numbers<[1], [0], [0], [1], [0, 0, 1, 1], [], []>} : vector<16x8xbf16>, vector<8x32xbf16>, vector<16x32xf32> -> vector<16x32xf32>
    %154 = arith.addf %128, %153 : vector<16x32xf32>
    %c0_72 = arith.constant 0 : index
    %c0_73 = arith.constant 0 : index
    %155 = vector.load %arg12[%c0_72, %c0_73] : memref<1x32xf32, #tpu.memory_space<vmem>>, vector<1x32xf32>
    %156 = vector.broadcast %155 : vector<1x32xf32> to vector<16x32xf32>
    %157 = arith.addf %154, %156 : vector<16x32xf32>
    %158 = vector.shape_cast %157 : vector<16x32xf32> to vector<1x16x32xf32>
    %c0_74 = arith.constant 0 : index
    %c0_75 = arith.constant 0 : index
    %c0_76 = arith.constant 0 : index
    %159 = vector.load %arg13[%c0_74, %c0_75, %c0_76] : memref<1x16x32xf32, #tpu.memory_space<vmem>>, vector<1x16x32xf32>
    tpu.vector_store %arg13[%c0_74, %c0_75, %c0_76], %158 {strides = array<i32>} : memref<1x16x32xf32, #tpu.memory_space<vmem>>, vector<1x16x32xf32>,
    %c0_77 = arith.constant 0 : index
    %c0_78 = arith.constant 0 : index
    %c0_79 = arith.constant 0 : index
    %160 = vector.load %arg14[%c0_77, %c0_78, %c0_79] : memref<1x16x16xf32, #tpu.memory_space<vmem>>, vector<1x16x16xf32>
    tpu.vector_store %arg14[%c0_77, %c0_78, %c0_79], %146 {strides = array<i32>} : memref<1x16x16xf32, #tpu.memory_space<vmem>>, vector<1x16x16xf32>,
    return
  }
  func.func @transform_0(%arg0: i32) -> (i32, i32, i32) {
    %c0_i32 = arith.constant 0 : i32
    %c0_i32_0 = arith.constant 0 : i32
    %c0_i32_1 = arith.constant 0 : i32
    return %arg0, %c0_i32, %c0_i32_0 : i32, i32, i32
  }
  func.func @transform_1(%arg0: i32) -> (i32, i32) {
    %c0_i32 = arith.constant 0 : i32
    %c0_i32_0 = arith.constant 0 : i32
    %c0_i32_1 = arith.constant 0 : i32
    return %c0_i32, %c0_i32_0 : i32, i32
  }
  func.func @transform_2(%arg0: i32) -> (i32, i32) {
    %c0_i32 = arith.constant 0 : i32
    %c0_i32_0 = arith.constant 0 : i32
    %c0_i32_1 = arith.constant 0 : i32
    return %c0_i32, %c0_i32_0 : i32, i32
  }
  func.func @transform_3(%arg0: i32) -> (i32, i32) {
    %c0_i32 = arith.constant 0 : i32
    %c0_i32_0 = arith.constant 0 : i32
    %c0_i32_1 = arith.constant 0 : i32
    return %c0_i32, %c0_i32_0 : i32, i32
  }
  func.func @transform_4(%arg0: i32) -> (i32, i32) {
    %c0_i32 = arith.constant 0 : i32
    %c0_i32_0 = arith.constant 0 : i32
    %c0_i32_1 = arith.constant 0 : i32
    return %c0_i32, %c0_i32_0 : i32, i32
  }
  func.func @transform_5(%arg0: i32) -> (i32, i32, i32) {
    %c0_i32 = arith.constant 0 : i32
    %c0_i32_0 = arith.constant 0 : i32
    %c0_i32_1 = arith.constant 0 : i32
    %c0_i32_2 = arith.constant 0 : i32
    return %c0_i32, %c0_i32_0, %c0_i32_1 : i32, i32, i32
  }
  func.func @transform_6(%arg0: i32) -> (i32, i32) {
    %c0_i32 = arith.constant 0 : i32
    %c0_i32_0 = arith.constant 0 : i32
    %c0_i32_1 = arith.constant 0 : i32
    return %c0_i32, %c0_i32_0 : i32, i32
  }
  func.func @transform_7(%arg0: i32) -> (i32, i32) {
    %c0_i32 = arith.constant 0 : i32
    %c0_i32_0 = arith.constant 0 : i32
    %c0_i32_1 = arith.constant 0 : i32
    return %c0_i32, %c0_i32_0 : i32, i32
  }
  func.func @transform_8(%arg0: i32) -> (i32, i32) {
    %c0_i32 = arith.constant 0 : i32
    %c0_i32_0 = arith.constant 0 : i32
    %c0_i32_1 = arith.constant 0 : i32
    return %c0_i32, %c0_i32_0 : i32, i32
  }
  func.func @transform_9(%arg0: i32) -> (i32, i32) {
    %c0_i32 = arith.constant 0 : i32
    %c0_i32_0 = arith.constant 0 : i32
    %c0_i32_1 = arith.constant 0 : i32
    return %c0_i32, %c0_i32_0 : i32, i32
  }
  func.func @transform_10(%arg0: i32) -> (i32, i32, i32) {
    %c0_i32 = arith.constant 0 : i32
    %c0_i32_0 = arith.constant 0 : i32
    %c0_i32_1 = arith.constant 0 : i32
    %c0_i32_2 = arith.constant 0 : i32
    return %c0_i32, %c0_i32_0, %c0_i32_1 : i32, i32, i32
  }
  func.func @transform_11(%arg0: i32) -> (i32, i32) {
    %c0_i32 = arith.constant 0 : i32
    %c0_i32_0 = arith.constant 0 : i32
    %c0_i32_1 = arith.constant 0 : i32
    return %c0_i32, %c0_i32_0 : i32, i32
  }
  func.func @transform_12(%arg0: i32) -> (i32, i32, i32) {
    %c0_i32 = arith.constant 0 : i32
    %c0_i32_0 = arith.constant 0 : i32
    %c0_i32_1 = arith.constant 0 : i32
    return %arg0, %c0_i32, %c0_i32_0 : i32, i32, i32
  }
  func.func @transform_13(%arg0: i32) -> (i32, i32, i32) {
    %c0_i32 = arith.constant 0 : i32
    %c0_i32_0 = arith.constant 0 : i32
    %c0_i32_1 = arith.constant 0 : i32
    return %arg0, %c0_i32, %c0_i32_0 : i32, i32, i32
  }
}

</mosaic_0001>

<bundles_post_ra>
// kernel: tpu_custom_call.1
= control target key start
LH: loop header
LB: loop body
LE: loop exit
PB: predicated region body
PF: predicated region fallthrough
CT: control target
= control target key end

     0   :  { %s2760_s0 = inlined_call_operand.vmem [shape: bf16[2,16,24], index: 0, kind: input, shape index: {}]   ;;  %s2761_s1 = inlined_call_operand.vmem [shape: f32[16,32], index: 1, kind: input, shape index: {}]   ;;  %s2762_s2 = inlined_call_operand.hbm [shape: bf16[24,32], index: 2, kind: input, shape index: {}]   ;;  %s2763_s3 = inlined_call_operand.vmem [shape: f32[1,32], index: 3, kind: input, shape index: {}]   ;;  %s2764_s4 = inlined_call_operand.vmem [shape: f32[1,32], index: 4, kind: input, shape index: {}]   ;;  %s2765_s5 = inlined_call_operand.vmem [shape: bf16[4,16,8], index: 5, kind: input, shape index: {}]   ;;  %s2766_s6 = inlined_call_operand.vmem [shape: bf16[32,32], index: 6, kind: input, shape index: {}]   ;;  %s2767_s7 = inlined_call_operand.hbm [shape: f32[1,32], index: 7, kind: input, shape index: {}]   ;;  %s2768_s8 = inlined_call_operand.hbm [shape: bf16[32,32], index: 8, kind: input, shape index: {}]   ;;  %s2769_s9 = inlined_call_operand.hbm [shape: f32[1,32], index: 9, kind: input, shape index: {}]   ;;  %s2770_s10 = inlined_call_operand.vmem [shape: bf16[4,8,32], index: 10, kind: input, shape index: {}]   ;;  %s2771_s11 = inlined_call_operand.vmem [shape: f32[1,32], index: 11, kind: input, shape index: {}]   ;;  %s2772_s12 = inlined_call_operand.hbm [shape: f32[2,16,32], index: 12, kind: output, shape index: {0}]   ;;  %s2773_s13 = inlined_call_operand.hbm [shape: f32[2,16,16], index: 13, kind: output, shape index: {1}]  }
   0x1   :  { %2784 = sst [smem:[#allocation24_spill]] %s2762_s2 }
   0x2   :  { %2785 = sst [smem:[#allocation25_spill]] %s2767_s7 }
   0x3   :  { %2786 = sst [smem:[#allocation26_spill]] %s2772_s12 }
   0x4   :  { %19 = vsyncpa [#allocation3], 0 }
   0x5   :  { %20 = vsyncpa [#allocation6], 0 }
   0x6   :  { %21 = vsyncpa [#allocation9], 0 }
   0x7   :  { %22 = vsyncpa [#allocation4], 0 }
   0x8   :  { %24 = vsyncpa [#allocation4 + $0x1], 0 }
   0x9   :  { %25 = vsyncpa [#allocation12], 0 }
   0xa   :  { %27 = vsyncpa [#allocation12 + $0x1], 0  ;;  %s2312_s25 = smov 0   ;;  %s2314_s26 = smov 0  }
   0xb   :  { %s2316_s27 = smov 0   ;;  %s2318_s28 = smov 0  }
   0xc LB: > { %2787 = sst [smem:[#allocation18_spill]] %s2213_s25  ;;  %s2333_s29 = sadd.s32 4294967295, %s2225_s28   ;;  %s2225_s28 = sphi %s2318_s28, %s2813_s28   ;;  %s2221_s27 = sphi %s2316_s27, %s2815_s27   ;;  %s2217_s26 = sphi %s2314_s26, %s2817_s26   ;;  %s2213_s25 = sphi %s2312_s25, %s2816_s25  }
   0xd   : > { %2788 = sst [smem:[#allocation19_spill]] %s2221_s27  ;;  %s1670_s30 = sadd.s32 4294967294, %s2225_s28  }
   0xe   : > { %2789 = sst [smem:[#allocation20_spill]] %s2225_s28  ;;  %s2337_s14 = sadd.s32 1, %s2225_s28  }
   0xf   : > { %2790 = sst [smem:[#allocation21_spill]] %s2337_s14  ;;  %s297_s15 = sadd.s32 1, %s2221_s27 }
  0x10   : > { %s294_s16 = ssub.s32 %s2225_s28, %s2337_s14  ;;  %p307_p0 = scmp.ne.s32.totalorder %s2221_s27, %s2217_s26 }
  0x11   : > { %p295_p1 = scmp.eq.s32.totalorder %s294_s16, 0  ;;  %p308_p2 = scmp.eq.s32.totalorder %s2333_s29, 1 }
  0x12   : > { %p313_p3 = scmp.ne.s32.totalorder %s2217_s26, %s2213_s25  ;;  %p314_p4 = scmp.eq.s32.totalorder %s1670_s30, 1 }
  0x13   : > { %s2348_s17 = scalar_select %p295_p1, %s2221_s27, %s297_s15  }
  0x14   : > { %p2350_p5 = por %p308_p2, %p307_p0  ;;  %p2354_p6 = por %p314_p4, %p313_p3 }
  0x15   : > { %2791 = sst [smem:[#allocation22_spill]] %s2348_s17  ;;  %p1671_p7 = scmp.ge.s32.totalorder %s2225_s28, 1 }
  0x16   : > { %s2792_s18 = scalar_select %p2350_p5, 1, 0 }
  0x17   : > { %s2793_s19 = scalar_select %p2354_p6, 1, 0 }
  0x18   : > { %p347_p8 = scmp.lt.s32.totalorder %s2225_s28, 3  ;;  %p2779_p9 = scmp.eq.s32.totalorder %s2333_s29, 0 }
  0x19   : > { %2794 = sst [smem:[#allocation23_spill]] %s2793_s19  ;;  %s2227_s21 = smov [#allocation5]  }
  0x1a   : > { %p2361_p10 = pnand %p1671_p7, %p347_p8  ;;  %s388_s22 = sshll.u32 %s2227_s21, 4  ;;  %s389_s22 = int_to_ptr.vmem [resolvable:$true] %s388_s22 }
  0x1b   : > { %s2228_s23 = smov [#allocation2]   ;;  %s2229_s15 = smov [#allocation7]  }
  0x1c   : > { %s2795_s20 = scalar_select %p2361_p10, 1, 0 }
  0x1d   : > { %p1886_p11 = pneg %p2361_p10  ;;  %s362_s24 = sshll.u32 %s2228_s23, 4  ;;  %s2373_s24 = int_to_ptr.vmem [resolvable:$true] %s362_s24 }
  0x1e   : > { %s2375_s16 = sshll.u32 %s2229_s15, 4  ;;  %s2797_s7 = sld [smem:[#allocation25_spill]]  ;;  %s399_s16 = int_to_ptr.vmem [resolvable:$true] %s2375_s16 }
  0x1f   : > { %p2369_p12 = pnand %p2779_p9, %p1886_p11 }
  0x21   : > { %p2385_p0 = pneg %p2369_p12 }
  0x24   : > { %s2007_s21 = scalar_lea.hbm %s2797_s7, 16 }
  0x25   : > { %p2008_p13 = scmp.ne.s32.totalorder %s2797_s7, %s2007_s21  ;;  %p2014_p3 = scmp.lt.u32.totalorder %s2007_s21, %s2797_s7 }
  0x27   : > { %p2010_p1 = pnand %p2385_p0, %p2008_p13 }
  0x29   : > { %p2011_p2 = pneg %p2010_p1 }
  0x2b   : > { %p2016_p4 = pnand %p2014_p3, %p2011_p2 }
  0x2d   : > { %2019 = shalt.err (!%p2016_p4)
}
  0x2e   : > { %s2020_s27 = scalar_lea.vmem %s389_s22, 16  ;;  %s2027_s14 = scalar_lea.vmem %s389_s22, 32 }
  0x2f   : > { %p2021_p7 = scmp.ne.s32.totalorder %s389_s22, %s2020_s27  ;;  %p2028_p9 = scmp.lt.s32.totalorder %s389_s22, %s389_s22 }
  0x30   : > { %p2029_p6 = scmp.lt.s32.totalorder %s2027_s14, %s2020_s27 }
  0x31   : > { %p2023_p8 = pnand %p2021_p7, %p2385_p0 }
  0x32   : > { %p2030_p5 = por %p2029_p6, %p2028_p9 }
  0x33   : > { %p2024_p11 = pneg %p2023_p8 }
  0x35   : > { %p2031_p10 = pnand %p2030_p5, %p2024_p11 }
  0x37   : > { %2034 = shalt.err (!%p2031_p10)
}
  0x38   : > { %1892 = dma.hbm_to_vmem [thread:$0]  (!%p2369_p12), %s2797_s7, 16, %s389_s22, [#allocation6]  }
  0x39   : > { %s2799_s2 = sld [smem:[#allocation24_spill]] }
  0x3f   : > { %s2035_s15 = scalar_lea.hbm %s2799_s2, 192 }
  0x40   : > { %p2036_p13 = scmp.ne.s32.totalorder %s2799_s2, %s2035_s15  ;;  %p2042_p5 = scmp.lt.u32.totalorder %s2035_s15, %s2799_s2 }
  0x42   : > { %p2038_p1 = pnand %p2036_p13, %p2385_p0 }
  0x44   : > { %p2039_p6 = pneg %p2038_p1 }
  0x46   : > { %p2044_p9 = pnand %p2042_p5, %p2039_p6 }
  0x48   : > { %2047 = shalt.err (!%p2044_p9)
}
  0x49   : > { %s2048_s22 = scalar_lea.vmem %s2373_s24, 192  ;;  %p2056_p4 = scmp.lt.s32.totalorder %s2373_s24, %s2373_s24 }
  0x4a   : > { %p2049_p10 = scmp.ne.s32.totalorder %s2373_s24, %s2048_s22  ;;  %p2057_p7 = scmp.lt.s32.totalorder %s2048_s22, %s2048_s22 }
  0x4c   : > { %p2051_p2 = pnand %p2049_p10, %p2385_p0  ;;  %p2058_p8 = por %p2057_p7, %p2056_p4 }
  0x4e   : > { %p2052_p3 = pneg %p2051_p2 }
  0x50   : > { %p2059_p11 = pnand %p2058_p8, %p2052_p3 }
  0x52   : > { %2062 = shalt.err (!%p2059_p11)
}
  0x53   : > { %s2230_s12 = smov 64   ;;  %s2231_s28 = smov 4  }
  0x54   : > { %1889 = dma.hbm_to_vmem [thread:$0]  (!%p2369_p12), %s2799_s2, 192, %s2373_s24, [#allocation3], %s2230_s12, %s2230_s12, %s2231_s28  }
  0x55   : > { %s2063_s15 = scalar_lea.hbm %s2768_s8, 256 }
  0x56   : > { %p2064_p13 = scmp.ne.s32.totalorder %s2768_s8, %s2063_s15  ;;  %p2070_p5 = scmp.lt.u32.totalorder %s2063_s15, %s2768_s8 }
  0x58   : > { %p2066_p1 = pnand %p2064_p13, %p2385_p0 }
  0x5a   : > { %p2067_p6 = pneg %p2066_p1 }
  0x5c   : > { %p2072_p9 = pnand %p2070_p5, %p2067_p6 }
  0x5e   : > { %2075 = shalt.err (!%p2072_p9)
}
  0x5f   : > { %s2076_s17 = scalar_lea.vmem %s399_s16, 256  ;;  %p2084_p4 = scmp.lt.s32.totalorder %s399_s16, %s399_s16 }
  0x60   : > { %p2077_p10 = scmp.ne.s32.totalorder %s399_s16, %s2076_s17  ;;  %p2085_p7 = scmp.lt.s32.totalorder %s2076_s17, %s2076_s17 }
  0x62   : > { %p2079_p2 = pnand %p2077_p10, %p2385_p0  ;;  %p2086_p8 = por %p2085_p7, %p2084_p4 }
  0x64   : > { %p2080_p3 = pneg %p2079_p2 }
  0x66   : > { %p2087_p11 = pnand %p2086_p8, %p2080_p3 }
  0x68   : > { %2090 = shalt.err (!%p2087_p11)
}
  0x69   : > { %1895 = dma.hbm_to_vmem [thread:$0]  (!%p2369_p12), %s2768_s8, 256, %s399_s16, [#allocation6], %s2230_s12, %s2230_s12, %s2231_s28  }
  0x6a   : > { %s2232_s7 = smov [#allocation8]   ;;  %s2091_s27 = scalar_lea.hbm %s2769_s9, 16 }
  0x6b   : > { %s412_s25 = sshll.u32 %s2232_s7, 4  ;;  %p2092_p13 = scmp.ne.s32.totalorder %s2769_s9, %s2091_s27  ;;  %s413_s25 = int_to_ptr.vmem [resolvable:$true] %s412_s25 }
  0x6c   : > { %p2098_p5 = scmp.lt.u32.totalorder %s2091_s27, %s2769_s9 }
  0x6d   : > { %p2094_p1 = pnand %p2092_p13, %p2385_p0 }
  0x6f   : > { %p2095_p6 = pneg %p2094_p1 }
  0x71   : > { %p2100_p9 = pnand %p2098_p5, %p2095_p6 }
  0x73   : > { %2103 = shalt.err (!%p2100_p9)
}
  0x74   : > { %s2104_s16 = scalar_lea.vmem %s413_s25, 16  ;;  %s2111_s12 = scalar_lea.vmem %s413_s25, 32 }
  0x75   : > { %p2105_p10 = scmp.ne.s32.totalorder %s413_s25, %s2104_s16  ;;  %p2112_p4 = scmp.lt.s32.totalorder %s413_s25, %s413_s25 }
  0x76   : > { %p2113_p7 = scmp.lt.s32.totalorder %s2111_s12, %s2104_s16 }
  0x77   : > { %p2107_p2 = pnand %p2105_p10, %p2385_p0 }
  0x78   : > { %p2114_p8 = por %p2113_p7, %p2112_p4 }
  0x79   : > { %p2108_p3 = pneg %p2107_p2 }
  0x7b   : > { %p2115_p11 = pnand %p2114_p8, %p2108_p3 }
  0x7d   : > { %2118 = shalt.err (!%p2115_p11)
}
  0x7e   : > { %1898 = dma.hbm_to_vmem [thread:$0]  (!%p2369_p12), %s2769_s9, 16, %s413_s25, [#allocation9]  }
  0x7f   : > { %p2800_p13 = scmp.ne.s32.totalorder %s2795_s20, 0 }
  0x80   : > { %p2801_p1 = scmp.eq.s32.totalorder (!%p2800_p13), %s2333_s29, 0 }
  0x81   : > { %439 = sbr.rel (%p2800_p13) target bundleno = 3304 (0xce8), region = 68 }
  0x88   : > { %2192 = dma.done.wait (%p2801_p1), [#allocation3], 192   ;;  %p2802_p0 = pmov %p2801_p1 }
  0x8a   : > { %2194 = vsyncadd (%p2802_p0), [#allocation3], 4294967104  ;;  %p2803_p6 = pmov %p2802_p0 }
  0x8b   : > { %p2804_p5 = pmov %p2802_p0 }
  0x8c   : > { %2196 = dma.done.wait (%p2803_p6), [#allocation6], 272  }
  0x8d   : > { %2198 = vsyncadd (%p2804_p5), [#allocation6], 4294967024  ;;  %p2805_p9 = pmov %p2802_p0 }
  0x8e   : > { %p2806_p12 = pmov %p2802_p0 }
  0x8f   : > { %2200 = dma.done.wait (%p2805_p9), [#allocation9], 16  }
  0x90   : > { %2202 = vsyncadd (%p2806_p12), [#allocation9], 4294967280  ;;  %p500_p10 = scmp.lt.s32.totalorder %s2333_s29, 1  ;;  %v2233_v0 = vmov 0.0   ;;  %vm2234_vm0 = vmmov 0   ;;  %v1960_v1 = vld [vmem:[#allocation2] sm:$0xff]  }
  0x91   : > { %1770 = vmatprep.subr.bf16.mxu0 %v2233_v0  ;;  %1774 = vmatprep.mubr.msk.bf16.mxu0 %vm2234_vm0, %v2233_v0  ;;  %vm529_vm1 = vcmask 1043456   ;;  %v1961_v2 = vld [vmem:[#allocation2 + $0x8] ss:$0 sps:$4 sm:$0xff]   ;;  %vm525_vm2 = vcmask 195584   ;;  %vm576_vm3 = vcmask 261120   ;;  %v1963_v21 = vld [vmem:[#allocation7] sm:$0xff]  }
  0x92   : > { %s501_s2 = scalar_select %p500_p10, %s2333_s29, 1  ;;  %1778 = vmatprep.subr.bf16.mxu1 %v2233_v0  ;;  %1782 = vmatprep.mubr.msk.bf16.mxu1 %vm2234_vm0, %v2233_v0  ;;  %v531_v3 = vsel %vm529_vm1, %v1961_v2, 0  ;;  %v1964_v22 = vld [vmem:[%s2766_s6] sm:$0xff]   ;;  %v1965_v23 = vld [vmem:[#allocation7 + $0x8] sm:$0xff]   ;;  %v1966_v24 = vld [vmem:[%s2766_s6 + $0x8] sm:$0xff]   ;;  %vm769_vm4 = vcmask 64512  }
  0x93   : > { %1771 = vmatpush3.bf16.msra.mxu0 %v1960_v1  ;;  %1779 = vmatpush3.bf16.msra.mxu1 %v1964_v22  ;;  %v1690_v32 = vld [vmem:[%s2763_s3] ss:$0 sm:$0xff]  ;;  %v621_v41 = vld [vmem:[%s2761_s1 + $0x8] sm:$0xff]  ;;  %v1696_v47 = vld [vmem:[#allocation8] ss:$0 sm:$0xff]  ;;  %vm817_vm5 = vcmask 130048  }
  0x94   : > { %s1734_s20 = sshll.u32 %s501_s2, 3  ;;  %1772 = vmatprep.subr.bf16.mxu0 %v2233_v0  ;;  %1780 = vmatprep.subr.bf16.mxu1 %v2233_v0  ;;  %v1691_v36 = vld [vmem:[%s2764_s4] ss:$0 sm:$0xff]  ;;  %v1692_v50 = vld [vmem:[#allocation5] ss:$0 sm:$0xff]  ;;  %s2235_s2 = smov 120  }
  0x95   : > { %s504_s19 = scalar_lea.vmem %s2760_s0, %s1734_s20  ;;  %v620_v40 = vld [vmem:[%s2761_s1] sm:$0xff]  ;;  %s2236_s7 = smov 112  }
  0x96   : > { %v1962_v4 = vld [vmem:[%s504_s19] sm:$0xff]   ;;  %s2237_s17 = smov 104   ;;  %s2650_s30 = sand.u32 1, %s2217_s26  }
  0x97   : > { %1773 = vmatpush3.bf16.msra.mxu0 %v531_v3  ;;  %1781 = vmatpush3.bf16.msra.mxu1 %v1966_v24  ;;  %v1967_v1 = vld [vmem:[%s2765_s5] sm:$0xff]   ;;  %s1682_s23 = sshll.u32 %s2650_s30, 4  ;;  %s1506_s14 = scalar_lea.sflag [#allocation12], %s2650_s30 }
  0x98   : > { %1786 = vmatprep.subr.bf16.mxu0 %v2233_v0  ;;  %1794 = vmatprep.subr.bf16.mxu1 %v2233_v0  ;;  %s499_s19 = scalar_lea.vmem [#allocation11], %s1682_s23  ;;  %p2807_p3 = scmp.ne.s32.totalorder %s2792_s18, 0 }
  0x99   : > { %s1535_s27 = sshll.u32 %s499_s19, 4  ;;  %s2669_s27 = int_to_ptr.vmem [resolvable:$true] %s1535_s27 }
  0x9a   : > { %1775 = vmatmul.mubr.msk.bf16.vlgmr.msra.gmra.mrb[0].mxu0 %vm525_vm2, %v1962_v4  ;;  %v1968_v4 = vld [vmem:[%s2765_s5 + $0x8] sm:$0xff]   ;;  %s2119_s22 = scalar_lea.vmem %s2669_s27, 256 }
  0x9b   : > { %1790 = vmatprep.mubr.msk.bf16.mxu0 %vm2234_vm0, %v2233_v0  ;;  %1787 = vmatpush3.bf16.msra.mxu0 %v1963_v21  ;;  %p2120_p2 = scmp.ne.s32.totalorder %s2669_s27, %s2119_s22 }
  0x9c   : > { %1788 = vmatprep.subr.bf16.mxu0 %v2233_v0 }
  0x9d   : > { %p2121_p4 = pnand %p2120_p2, %p2807_p3 }
  0x9f   : > { %1789 = vmatpush3.bf16.msra.mxu0 %v1965_v23  ;;  %p2122_p7 = pneg %p2121_p4 }
  0xa0   : > { %1800 = vmatprep.subr.bf16.mxu0 %v2233_v0 }
 0x16d   : > { %v567_v5 = vpop.f32.mrb[0].mxu0 }
 0x16e   : > { %v1776_v6 = vpop.f32.mrb[1].mxu0  ;;  %v577_v7 = vsel %vm576_vm3, %v567_v5, 0.0 }
 0x16f   : > { %578 = vadd.xlane.f32.xlu0 %v577_v7  ;;  %v570_v8 = vpop.f32.mrb[2].mxu0 }
 0x170   : > { %v1777_v9 = vpop.f32.mrb[3].mxu0  ;;  %v580_v10 = vsel %vm576_vm3, %v570_v8, 0.0 }
 0x173   : > { %581 = vadd.xlane.f32.xlu0 %v580_v10 }
 0x1fc   : > { %v579_v11 = vpop.xlane.xlu0 %578 }
 0x1fd   : > { %v584_v12 = vmul.f32 0.03125, %v579_v11 }
 0x1ff   : > { %v586_v13 = vsub.f32 %v567_v5, %v584_v12 }
 0x200   : > { %v582_v14 = vpop.xlane.xlu0 %581 }
 0x201   : > { %v585_v15 = vmul.f32 0.03125, %v582_v14  ;;  %v588_v16 = vmul.f32 %v586_v13, %v586_v13 }
 0x203   : > { %v587_v17 = vsub.f32 %v570_v8, %v585_v15  ;;  %v590_v18 = vsel %vm576_vm3, %v588_v16, 0.0 }
 0x204   : > { %591 = vadd.xlane.f32.xlu1 %v590_v18 }
 0x205   : > { %v589_v19 = vmul.f32 %v587_v17, %v587_v17 }
 0x207   : > { %v593_v20 = vsel %vm576_vm3, %v589_v19, 0.0 }
 0x208   : > { %594 = vadd.xlane.f32.xlu1 %v593_v20 }
 0x291   : > { %v592_v25 = vpop.xlane.xlu1 %591 }
 0x292   : > { %v596_v26 = vmul.f32 0.03125, %v592_v25 }
 0x294   : > { %v598_v27 = vadd.f32 1e-05, %v596_v26 }
 0x295   : > { %v595_v28 = vpop.xlane.xlu1 %594 }
 0x296   : > { %1971 = vrsqrt.f32 %v598_v27  ;;  %v597_v29 = vmul.f32 0.03125, %v595_v28 }
 0x298   : > { %v599_v30 = vadd.f32 1e-05, %v597_v29 }
 0x29a   : > { %1973 = vrsqrt.f32 %v599_v30 }
 0x2a0   : > { %v1972_v31 = vpop.eup %1971 }
 0x2a1   : > { %v602_v33 = vmul.f32 %v1972_v31, %v586_v13 }
 0x2a3   : > { %v610_v34 = vmul.f32 %v1690_v32, %v602_v33 }
 0x2a4   : > { %v1974_v35 = vpop.eup %1973 }
 0x2a5   : > { %v603_v37 = vmul.f32 %v1974_v35, %v587_v17  ;;  %v618_v39 = vadd.f32 %v1691_v36, %v610_v34 }
 0x2a7   : > { %v611_v38 = vmul.f32 %v1690_v32, %v603_v37  ;;  %v622_v44 = vadd.f32 %v620_v40, %v618_v39 }
 0x2a9   : > { %v619_v42 = vadd.f32 %v1691_v36, %v611_v38 }
 0x2ab   : > { %v692_v43 = vpack.c.bf16 %v619_v42, %v618_v39  ;;  %v623_v45 = vadd.f32 %v621_v41, %v619_v42 }
 0x2ad   : > { %1791 = vmatmul.mubr.msk.bf16.vlgmr.msra.gmra.mrb[4].mxu0 %vm576_vm3, %v692_v43  ;;  %v624_v46 = vpack.c.bf16 %v623_v45, %v622_v44  ;;  %v1708_v44 = vld [vmem:[%s2770_s10 + $0x4] sm:$0xf] }
 0x2ae   : > { %1802 = vmatprep.mubr.msk.bf16.mxu0 %vm2234_vm0, %v2233_v0  ;;  %v1031_v45 = vsel %vm529_vm1, %v1708_v44, 0 }
 0x2af   : > { %1783 = vmatmul.mubr.msk.bf16.vlgmr.msra.gmra.mrb[0].mxu1 %vm576_vm3, %v624_v46 }
 0x2b0   : > { %1796 = vmatprep.mubr.msk.bf16.mxu1 %vm2234_vm0, %v2233_v0 }
 0x380   : > { %v753_v48 = vpop.f32.mrb[4].mxu0 }
 0x381   : > { %v1792_v49 = vpop.f32.mrb[5].mxu0  ;;  %v754_v53 = vadd.f32 %v1696_v47, %v753_v48 }
 0x382   : > { %v685_v51 = vpop.f32.mrb[0].mxu1  ;;  %v756_v52 = vpop.f32.mrb[6].mxu0 }
 0x383   : > { %v757_v54 = vadd.f32 %v1696_v47, %v756_v52  ;;  %v1784_v55 = vpop.f32.mrb[1].mxu1  ;;  %v1793_v56 = vpop.f32.mrb[7].mxu0  ;;  %v686_v58 = vadd.f32 %v1692_v50, %v685_v51 }
 0x384   : > { %v688_v57 = vpop.f32.mrb[2].mxu1 }
 0x385   : > { %v2523_v59 = vpack.c.bf16 %v757_v54, %v754_v53  ;;  %v689_v60 = vadd.f32 %v1692_v50, %v688_v57  ;;  %v1785_v61 = vpop.f32.mrb[3].mxu1  ;;  %v890_v54 = vld [vmem:[%s2770_s10] sm:$0xf] }
 0x386   : > { %v1078_v61 = vsel %vm529_vm1, %v890_v54, 0  ;;  %v1716_v54 = vld [vmem:[%s2770_s10 + $0x8] sm:$0xf] }
 0x387   : > { %v2525_v62 = vpack.c.bf16 %v689_v60, %v686_v58  ;;  %1801 = vmatpush3.bf16.msra.mxu0 %v2523_v59 }
 0x388   : > { %1812 = vmatprep.subr.bf16.mxu0 %v2233_v0 }
 0x389   : > { %900 = vrot.lane.b32.xlu0 %v2525_v62, %s2235_s2  ;;  %v774_v63 = vsel %vm769_vm4, %v2525_v62, 0 }
 0x38a   : > { %1795 = vmatpush3.bf16.xpose.msra.mxu1 %v774_v63 }
 0x38b   : > { %1806 = vmatprep.subr.bf16.mxu1 %v2233_v0 }
 0x391   : > { %1797 = vmatmul.mubr.msk.bf16.vlgmr.msra.gmra.mrb[4].mxu1 %vm769_vm4, %v1967_v1 }
 0x392   : > { %1808 = vmatprep.mubr.msk.bf16.mxu1 %vm2234_vm0, %v2233_v0 }
 0x3fb   : > { %v901_v2 = vpop.permute.xlu0 %900 }
 0x3fc   : > { %v906_v3 = vsel %vm769_vm4, %v901_v2, 0 }
 0x3fd   : > { %1807 = vmatpush3.bf16.xpose.msra.mxu1 %v906_v3 }
 0x3fe   : > { %1818 = vmatprep.subr.bf16.mxu1 %v2233_v0 }
 0x404   : > { %1809 = vmatmul.mubr.msk.bf16.vlgmr.msra.gmra.mrb[8].mxu1 %vm769_vm4, %v1968_v4 }
 0x405   : > { %1820 = vmatprep.mubr.msk.bf16.mxu1 %vm2234_vm0, %v2233_v0  ;;  %1819 = vmatpush3.bf16.msra.mxu1 %v1031_v45 }
 0x406   : > { %1830 = vmatprep.subr.bf16.mxu1 %v2233_v0 }
 0x464   : > { %v810_v5 = vpop.f32.mrb[4].mxu1 }
 0x465   : > { %v818_v6 = vsel %vm817_vm5, %v810_v5, -inf  ;;  %v1798_v7 = vpop.f32.mrb[5].mxu1 }
 0x466   : > { %819 = vmax.xlane.f32.xlu1 %v818_v6  ;;  %v813_v8 = vpop.f32.mrb[6].mxu1 }
 0x467   : > { %v821_v9 = vsel %vm817_vm5, %v813_v8, -inf  ;;  %v1799_v10 = vpop.f32.mrb[7].mxu1 }
 0x46a   : > { %822 = vmax.xlane.f32.xlu1 %v821_v9 }
 0x4d7   : > { %v942_v11 = vpop.f32.mrb[8].mxu1 }
 0x4d8   : > { %v1810_v12 = vpop.f32.mrb[9].mxu1  ;;  %v949_v13 = vsel %vm817_vm5, %v942_v11, -inf }
 0x4d9   : > { %950 = vmax.xlane.f32.xlu1 %v949_v13  ;;  %v945_v14 = vpop.f32.mrb[10].mxu1  ;;  %v1969_v13 = vld [vmem:[%s2765_s5 + $0x10] sm:$0xff]  }
 0x4da   : > { %v1811_v15 = vpop.f32.mrb[11].mxu1  ;;  %v952_v16 = vsel %vm817_vm5, %v945_v14, -inf }
 0x4dd   : > { %953 = vmax.xlane.f32.xlu1 %v952_v16 }
 0x4f3   : > { %v820_v17 = vpop.xlane.xlu1 %819 }
 0x4f4   : > { %v824_v18 = vsub.f32 %v810_v5, %v820_v17 }
 0x4f6   : > { %v826_v19 = vmul.f32 1.442695, %v824_v18 }
 0x4f7   : > { %v823_v20 = vpop.xlane.xlu1 %822 }
 0x4f8   : > { %1975 = vpow2.f32 %v826_v19  ;;  %v825_v21 = vsub.f32 %v813_v8, %v823_v20 }
 0x4fa   : > { %v828_v22 = vmul.f32 1.442695, %v825_v21 }
 0x4fc   : > { %1977 = vpow2.f32 %v828_v22 }
 0x502   : > { %v1976_v23 = vpop.eup %1975 }
 0x503   : > { %v830_v24 = vsel %vm817_vm5, %v1976_v23, 0.0 }
 0x504   : > { %831 = vadd.xlane.f32.xlu1 %v830_v24 }
 0x506   : > { %v1978_v25 = vpop.eup %1977 }
 0x507   : > { %v833_v26 = vsel %vm817_vm5, %v1978_v25, 0.0 }
 0x508   : > { %834 = vadd.xlane.f32.xlu1 %v833_v26 }
 0x566   : > { %v951_v27 = vpop.xlane.xlu1 %950 }
 0x567   : > { %v955_v28 = vsub.f32 %v942_v11, %v951_v27 }
 0x569   : > { %v957_v29 = vmul.f32 1.442695, %v955_v28 }
 0x56a   : > { %v954_v30 = vpop.xlane.xlu1 %953 }
 0x56b   : > { %1979 = vpow2.f32 %v957_v29  ;;  %v956_v31 = vsub.f32 %v945_v14, %v954_v30 }
 0x56d   : > { %v959_v32 = vmul.f32 1.442695, %v956_v31 }
 0x56f   : > { %1981 = vpow2.f32 %v959_v32 }
 0x575   : > { %v1980_v33 = vpop.eup %1979 }
 0x576   : > { %v961_v34 = vsel %vm817_vm5, %v1980_v33, 0.0 }
 0x577   : > { %962 = vadd.xlane.f32.xlu0 %v961_v34 }
 0x579   : > { %v1982_v35 = vpop.eup %1981 }
 0x57a   : > { %v964_v36 = vsel %vm817_vm5, %v1982_v35, 0.0 }
 0x57b   : > { %965 = vadd.xlane.f32.xlu1 %v964_v36 }
 0x58c   : > { %977 = vrot.lane.b32.xlu1 %v2523_v59, %s2235_s2 }
 0x590   : > { %1129 = vrot.lane.b32.xlu1 %v2525_v62, %s2236_s7 }
 0x591   : > { %v832_v37 = vpop.xlane.xlu1 %831 }
 0x592   : > { %1983 = vrcp.f32 %v832_v37 }
 0x595   : > { %v835_v38 = vpop.xlane.xlu1 %834 }
 0x596   : > { %1985 = vrcp.f32 %v835_v38 }
 0x59c   : > { %v1984_v39 = vpop.eup %1983 }
 0x59d   : > { %v837_v41 = vmul.f32 %v1984_v39, %v1976_v23 }
 0x59f   : > { %v840_v51 = vmul.f32 0.25, %v837_v41 }
 0x5a0   : > { %v1986_v40 = vpop.eup %1985 }
 0x5a1   : > { %v839_v42 = vmul.f32 %v1986_v40, %v1978_v25 }
 0x5a3   : > { %v844_v43 = vpack.c.bf16 %v839_v42, %v837_v41  ;;  %v841_v57 = vmul.f32 0.25, %v839_v42 }
 0x5a5   : > { %1803 = vmatmul.mubr.msk.bf16.vlgmr.msra.gmra.mrb[8].mxu0 %vm817_vm5, %v844_v43 }
 0x5a6   : > { %1814 = vmatprep.mubr.msk.bf16.mxu0 %vm2234_vm0, %v2233_v0 }
 0x604   : > { %v963_v46 = vpop.xlane.xlu0 %962 }
 0x605   : > { %1987 = vrcp.f32 %v963_v46 }
 0x608   : > { %v966_v47 = vpop.xlane.xlu1 %965 }
 0x609   : > { %1989 = vrcp.f32 %v966_v47 }
 0x60c   : > { %v978_v48 = vpop.permute.xlu1 %977 }
 0x60d   : > { %1813 = vmatpush3.bf16.msra.mxu0 %v978_v48 }
 0x60e   : > { %1824 = vmatprep.subr.bf16.mxu0 %v2233_v0 }
 0x60f   : > { %v1988_v49 = vpop.eup %1987 }
 0x610   : > { %v968_v50 = vmul.f32 %v1988_v49, %v1980_v33  ;;  %v1130_v8 = vpop.permute.xlu1 %1129 }
 0x611   : > { %v1135_v12 = vsel %vm769_vm4, %v1130_v8, 0 }
 0x612   : > { %v971_v52 = vmul.f32 0.25, %v968_v50 }
 0x613   : > { %v1990_v53 = vpop.eup %1989 }
 0x614   : > { %v2572_v55 = vadd.f32 %v971_v52, %v840_v51  ;;  %v970_v56 = vmul.f32 %v1990_v53, %v1982_v35  ;;  %v1970_v53 = vld [vmem:[%s2765_s5 + $0x18] sm:$0xff]  }
 0x616   : > { %v972_v58 = vmul.f32 0.25, %v970_v56  ;;  %v975_v60 = vpack.c.bf16 %v970_v56, %v968_v50 }
 0x618   : > { %v2575_v63 = vadd.f32 %v972_v58, %v841_v57  ;;  %1815 = vmatmul.mubr.msk.bf16.vlgmr.msra.gmra.mrb[12].mxu0 %vm817_vm5, %v975_v60 }
 0x619   : > { %1825 = vmatpush3.bf16.msra.mxu0 %v1078_v61  ;;  %1826 = vmatprep.mubr.msk.bf16.mxu0 %vm2234_vm0, %v2233_v0 }
 0x61a   : > { %1836 = vmatprep.subr.bf16.mxu0 %v2233_v0 }
 0x678   : > { %v882_v1 = vpop.f32.mrb[8].mxu0 }
 0x679   : > { %v1804_v2 = vpop.f32.mrb[9].mxu0 }
 0x67a   : > { %v885_v3 = vpop.f32.mrb[10].mxu0 }
 0x67b   : > { %v889_v4 = vpack.c.bf16 %v885_v3, %v882_v1  ;;  %v1805_v5 = vpop.f32.mrb[11].mxu0 }
 0x67d   : > { %1827 = vmatmul.mubr.msk.bf16.vlgmr.msra.gmra.mrb[16].mxu0 %vm769_vm4, %v889_v4 }
 0x67e   : > { %1838 = vmatprep.mubr.msk.bf16.mxu0 %vm2234_vm0, %v2233_v0 }
 0x6eb   : > { %v1017_v6 = vpop.f32.mrb[12].mxu0 }
 0x6ec   : > { %v1816_v7 = vpop.f32.mrb[13].mxu0 }
 0x6ed   : > { %v1020_v9 = vpop.f32.mrb[14].mxu0 }
 0x6ee   : > { %v1024_v10 = vpack.c.bf16 %v1020_v9, %v1017_v6  ;;  %v1817_v11 = vpop.f32.mrb[15].mxu0 }
 0x6f0   : > { %1821 = vmatmul.mubr.msk.bf16.vlgmr.msra.gmra.mrb[12].mxu1 %vm769_vm4, %v1024_v10 }
 0x6f1   : > { %1831 = vmatpush3.bf16.xpose.msra.mxu1 %v1135_v12  ;;  %1832 = vmatprep.mubr.msk.bf16.mxu1 %vm2234_vm0, %v2233_v0 }
 0x6f2   : > { %1842 = vmatprep.subr.bf16.mxu1 %v2233_v0 }
 0x6f8   : > { %1833 = vmatmul.mubr.msk.bf16.vlgmr.msra.gmra.mrb[16].mxu1 %vm769_vm4, %v1969_v13 }
 0x6f9   : > { %1844 = vmatprep.mubr.msk.bf16.mxu1 %vm2234_vm0, %v2233_v0 }
 0x750   : > { %v1114_v14 = vpop.f32.mrb[16].mxu0 }
 0x751   : > { %v1828_v15 = vpop.f32.mrb[17].mxu0 }
 0x752   : > { %v1117_v16 = vpop.f32.mrb[18].mxu0  ;;  %v1723_v15 = vld [vmem:[%s2770_s10 + $0xc] sm:$0xf] }
 0x753   : > { %v1829_v17 = vpop.f32.mrb[19].mxu0 }
 0x7c3   : > { %v1067_v18 = vpop.f32.mrb[12].mxu1 }
 0x7c4   : > { %v2595_v19 = vadd.f32 %v1114_v14, %v1067_v18  ;;  %v1822_v20 = vpop.f32.mrb[13].mxu1 }
 0x7c5   : > { %v1070_v21 = vpop.f32.mrb[14].mxu1 }
 0x7c6   : > { %v2597_v22 = vadd.f32 %v1117_v16, %v1070_v21  ;;  %v1823_v23 = vpop.f32.mrb[15].mxu1  ;;  %v1442_v16 = vsel %vm529_vm1, %v1723_v15, 0 }
 0x7cb   : > { %v1171_v24 = vpop.f32.mrb[16].mxu1 }
 0x7cc   : > { %v1834_v25 = vpop.f32.mrb[17].mxu1  ;;  %v1178_v26 = vsel %vm817_vm5, %v1171_v24, -inf }
 0x7cd   : > { %1179 = vmax.xlane.f32.xlu1 %v1178_v26  ;;  %v1174_v27 = vpop.f32.mrb[18].mxu1 }
 0x7ce   : > { %v1835_v28 = vpop.f32.mrb[19].mxu1  ;;  %v1181_v29 = vsel %vm817_vm5, %v1174_v27, -inf }
 0x7cf   : > { %1182 = vmax.xlane.f32.xlu0 %v1181_v29 }
 0x7de   : > { %1312 = vrot.lane.b32.xlu1 %v2525_v62, %s2237_s17 }
 0x85a   : > { %v1180_v30 = vpop.xlane.xlu1 %1179 }
 0x85b   : > { %v1184_v31 = vsub.f32 %v1171_v24, %v1180_v30 }
 0x85c   : > { %v1183_v32 = vpop.xlane.xlu0 %1182 }
 0x85d   : > { %v1186_v33 = vmul.f32 1.442695, %v1184_v31  ;;  %v1185_v34 = vsub.f32 %v1174_v27, %v1183_v32 }
 0x85e   : > { %v1313_v48 = vpop.permute.xlu1 %1312 }
 0x85f   : > { %1991 = vpow2.f32 %v1186_v33  ;;  %v1188_v35 = vmul.f32 1.442695, %v1185_v34  ;;  %v1318_v51 = vsel %vm769_vm4, %v1313_v48, 0 }
 0x861   : > { %1993 = vpow2.f32 %v1188_v35 }
 0x869   : > { %v1992_v36 = vpop.eup %1991 }
 0x86a   : > { %v1190_v37 = vsel %vm817_vm5, %v1992_v36, 0.0 }
 0x86b   : > { %v1994_v38 = vpop.eup %1993  ;;  %1191 = vadd.xlane.f32.xlu0 %v1190_v37 }
 0x86c   : > { %v1193_v39 = vsel %vm817_vm5, %v1994_v38, 0.0 }
 0x86f   : > { %1194 = vadd.xlane.f32.xlu0 %v1193_v39 }
 0x885   : > { %1205 = vrot.lane.b32.xlu0 %v2523_v59, %s2236_s7  ;;  %s1735_s7 = sshll.u32 %s2333_s29, 8 }
 0x886   : > { %s2667_s15 = scalar_lea.hbm %s2773_s13, %s1735_s7 }
 0x8f8   : > { %v1192_v62 = vpop.xlane.xlu0 %1191 }
 0x8f9   : > { %1995 = vrcp.f32 %v1192_v62 }
 0x8fc   : > { %v1195_v40 = vpop.xlane.xlu0 %1194 }
 0x8fd   : > { %1997 = vrcp.f32 %v1195_v40 }
 0x900   : > { %v1206_v41 = vpop.permute.xlu0 %1205 }
 0x901   : > { %1837 = vmatpush3.bf16.msra.mxu0 %v1206_v41 }
 0x902   : > { %1848 = vmatprep.subr.bf16.mxu0 %v2233_v0 }
 0x903   : > { %v1996_v42 = vpop.eup %1995 }
 0x904   : > { %v1197_v43 = vmul.f32 %v1996_v42, %v1992_v36 }
 0x906   : > { %v1200_v44 = vmul.f32 0.25, %v1197_v43 }
 0x907   : > { %v1998_v45 = vpop.eup %1997 }
 0x908   : > { %v2609_v46 = vadd.f32 %v1200_v44, %v2572_v55  ;;  %v1199_v47 = vmul.f32 %v1998_v45, %v1994_v38  ;;  %v1259_v55 = vsel %vm529_vm1, %v1716_v54, 0 }
 0x909   : > { %1843 = vmatpush3.bf16.msra.mxu1 %v1259_v55 }
 0x90a   : > { %v1201_v49 = vmul.f32 0.25, %v1199_v47  ;;  %v1204_v50 = vpack.c.bf16 %v1199_v47, %v1197_v43  ;;  %1854 = vmatprep.subr.bf16.mxu1 %v2233_v0 }
 0x90c   : > { %v2613_v52 = vadd.f32 %v1201_v49, %v2575_v63  ;;  %1839 = vmatmul.mubr.msk.bf16.vlgmr.msra.gmra.mrb[20].mxu0 %vm817_vm5, %v1204_v50 }
 0x90d   : > { %1849 = vmatpush3.bf16.xpose.msra.mxu0 %v1318_v51  ;;  %1850 = vmatprep.mubr.msk.bf16.mxu0 %vm2234_vm0, %v2233_v0 }
 0x90e   : > { %1860 = vmatprep.subr.bf16.mxu0 %v2233_v0 }
 0x914   : > { %1851 = vmatmul.mubr.msk.bf16.vlgmr.msra.gmra.mrb[24].mxu0 %vm769_vm4, %v1970_v53 }
 0x915   : > { %1862 = vmatprep.mubr.msk.bf16.mxu0 %vm2234_vm0, %v2233_v0  ;;  %1861 = vmatpush3.bf16.msra.mxu0 %v1442_v16 }
 0x9df   : > { %v1245_v56 = vpop.f32.mrb[20].mxu0 }
 0x9e0   : > { %v1840_v57 = vpop.f32.mrb[21].mxu0 }
 0x9e1   : > { %v1248_v58 = vpop.f32.mrb[22].mxu0 }
 0x9e2   : > { %v1252_v60 = vpack.c.bf16 %v1248_v58, %v1245_v56  ;;  %v1841_v61 = vpop.f32.mrb[23].mxu0 }
 0x9e4   : > { %1845 = vmatmul.mubr.msk.bf16.vlgmr.msra.gmra.mrb[20].mxu1 %vm769_vm4, %v1252_v60 }
 0x9e5   : > { %1856 = vmatprep.mubr.msk.bf16.mxu1 %vm2234_vm0, %v2233_v0 }
 0x9e7   : > { %v1354_v63 = vpop.f32.mrb[24].mxu0 }
 0x9e8   : > { %v1852_v1 = vpop.f32.mrb[25].mxu0  ;;  %v1361_v2 = vsel %vm817_vm5, %v1354_v63, -inf }
 0x9e9   : > { %1362 = vmax.xlane.f32.xlu0 %v1361_v2  ;;  %v1357_v3 = vpop.f32.mrb[26].mxu0 }
 0x9ea   : > { %v1853_v4 = vpop.f32.mrb[27].mxu0  ;;  %v1364_v5 = vsel %vm817_vm5, %v1357_v3, -inf }
 0x9eb   : > { %1365 = vmax.xlane.f32.xlu1 %v1364_v5 }
 0xa76   : > { %v1363_v6 = vpop.xlane.xlu0 %1362 }
 0xa77   : > { %v1367_v7 = vsub.f32 %v1354_v63, %v1363_v6 }
 0xa78   : > { %v1366_v8 = vpop.xlane.xlu1 %1365 }
 0xa79   : > { %v1369_v9 = vmul.f32 1.442695, %v1367_v7  ;;  %v1368_v10 = vsub.f32 %v1357_v3, %v1366_v8 }
 0xa7b   : > { %1999 = vpow2.f32 %v1369_v9  ;;  %v1371_v11 = vmul.f32 1.442695, %v1368_v10 }
 0xa7d   : > { %2001 = vpow2.f32 %v1371_v11 }
 0xa85   : > { %v2000_v12 = vpop.eup %1999 }
 0xa86   : > { %v1373_v0 = vsel %vm817_vm5, %v2000_v12, 0.0 }
 0xa87   : > { %v2002_v13 = vpop.eup %2001  ;;  %1374 = vadd.xlane.f32.xlu0 %v1373_v0 }
 0xa88   : > { %v1376_v14 = vsel %vm817_vm5, %v2002_v13, 0.0 }
 0xa8b   : > { %1377 = vadd.xlane.f32.xlu0 %v1376_v14 }
 0xaa1   : > { %1388 = vrot.lane.b32.xlu0 %v2523_v59, %s2237_s17  ;;  %s2238_s17 = smov [#allocation11]  }
 0xaa2   : > { %s2123_s16 = sshll.u32 %s2238_s17, 4  ;;  %s2124_s16 = int_to_ptr.vmem [resolvable:$false] %s2123_s16 }
 0xaa3   : > { %s2125_s12 = scalar_lea.vmem %s2124_s16, 512  ;;  %p2126_p8 = scmp.lt.s32.totalorder %s2669_s27, %s2124_s16 }
 0xaa4   : > { %p2127_p11 = scmp.lt.s32.totalorder %s2125_s12, %s2119_s22 }
 0xaa6   : > { %p2128_p13 = por %p2127_p11, %p2126_p8 }
 0xaa8   : > { %p2129_p1 = pnand %p2128_p13, %p2122_p7 }
 0xab7   : > { %v1295_v17 = vpop.f32.mrb[20].mxu1 }
 0xab8   : > { %v2644_v18 = vadd.f32 %v1295_v17, %v2595_v19  ;;  %v1846_v20 = vpop.f32.mrb[21].mxu1 }
 0xab9   : > { %v1298_v21 = vpop.f32.mrb[22].mxu1 }
 0xaba   : > { %v2647_v23 = vadd.f32 %v1298_v21, %v2597_v22  ;;  %v1847_v24 = vpop.f32.mrb[23].mxu1 }
 0xb14   : > { %v1375_v25 = vpop.xlane.xlu0 %1374 }
 0xb15   : > { %2003 = vrcp.f32 %v1375_v25 }
 0xb18   : > { %v1378_v59 = vpop.xlane.xlu0 %1377 }
 0xb19   : > { %2005 = vrcp.f32 %v1378_v59 }
 0xb1c   : > { %v1389_v26 = vpop.permute.xlu0 %1388 }
 0xb1d   : > { %1855 = vmatpush3.bf16.msra.mxu1 %v1389_v26 }
 0xb1f   : > { %v2004_v27 = vpop.eup %2003 }
 0xb20   : > { %v1380_v28 = vmul.f32 %v2004_v27, %v2000_v12 }
 0xb22   : > { %v1383_v19 = vmul.f32 0.25, %v1380_v28 }
 0xb23   : > { %v2006_v29 = vpop.eup %2005 }
 0xb24   : > { %v1385_v22 = vadd.f32 %v1383_v19, %v2609_v46  ;;  %v1382_v30 = vmul.f32 %v2006_v29, %v2002_v13 }
 0xb26   : > { %v1384_v31 = vmul.f32 0.25, %v1382_v30  ;;  %v1387_v32 = vpack.c.bf16 %v1382_v30, %v1380_v28  ;;  %1498 = vst.msk [vmem:[%s499_s19] sm:$0xff] %vm817_vm5, %v1385_v22 }
 0xb28   : > { %v1386_v33 = vadd.f32 %v1384_v31, %v2613_v52  ;;  %1857 = vmatmul.mubr.msk.bf16.vlgmr.msra.gmra.mrb[24].mxu1 %vm817_vm5, %v1387_v32 }
 0xb2a   : > { %1499 = vst.msk [vmem:[%s499_s19 + $0x8] sm:$0xff] %vm817_vm5, %v1386_v33 }
 0xbfb   : > { %v1428_v34 = vpop.f32.mrb[24].mxu1 }
 0xbfc   : > { %v1858_v35 = vpop.f32.mrb[25].mxu1 }
 0xbfd   : > { %v1431_v36 = vpop.f32.mrb[26].mxu1 }
 0xbfe   : > { %v1435_v37 = vpack.c.bf16 %v1431_v36, %v1428_v34  ;;  %v1859_v38 = vpop.f32.mrb[27].mxu1 }
 0xc00   : > { %1863 = vmatmul.mubr.msk.bf16.vlgmr.msra.gmra.mrb[28].mxu0 %vm769_vm4, %v1435_v37 }
 0xc01   : > { %2132 = shalt.err (!%p2129_p1)
}
 0xc02   : > { %s2133_s28 = scalar_lea.hbm %s2667_s15, 256  ;;  %s2137_s20 = scalar_lea.hbm %s2773_s13, 512 }
 0xc03   : > { %p2134_p0 = scmp.ne.s32.totalorder %s2667_s15, %s2133_s28  ;;  %p2138_p9 = scmp.lt.u32.totalorder %s2667_s15, %s2773_s13 }
 0xc04   : > { %p2139_p12 = scmp.lt.u32.totalorder %s2137_s20, %s2133_s28  ;;  %p2141_p2 = scmp.lt.u32.totalorder %s2133_s28, %s2667_s15 }
 0xc05   : > { %p2135_p6 = pnand %p2134_p0, %p2807_p3 }
 0xc06   : > { %p2140_p10 = por %p2139_p12, %p2138_p9 }
 0xc07   : > { %p2136_p5 = pneg %p2135_p6 }
 0xc08   : > { %p2142_p4 = por %p2141_p2, %p2140_p10 }
 0xc0a   : > { %p2143_p7 = pnand %p2142_p4, %p2136_p5 }
 0xc0c   : > { %2146 = shalt.err (!%p2143_p7)
}
 0xc0d   : > { %s2239_s21 = smov 128   ;;  %s2240_s22 = smov 8   ;;  %v1725_v62 = vld [vmem:[%s2771_s11] ss:$0 sm:$0xff] }
 0xc0e   : > { %1883 = dma.vmem_to_hbm [thread:$0]  (%p2807_p3), %s2669_s27, 256, %s2667_s15, %s1506_s14, %s2239_s21, %s2239_s21, %s2240_s22  }
 0xc0f   : > { %s492_s12 = scalar_lea.vmem [#allocation10], %s1682_s23  ;;  %s2808_s14 = sld [smem:[#allocation26_spill]] }
 0xc10   : > { %s1519_s28 = sshll.u32 %s492_s12, 4  ;;  %s1501_s23 = scalar_lea.sflag [#allocation4], %s2650_s30  ;;  %s2713_s28 = int_to_ptr.vmem [resolvable:$true] %s1519_s28 }
 0xc11   : > { %s2147_s2 = scalar_lea.vmem %s2713_s28, 256  ;;  %s2241_s20 = smov [#allocation10]  }
 0xc12   : > { %p2148_p8 = scmp.ne.s32.totalorder %s2713_s28, %s2147_s2  ;;  %s2151_s29 = sshll.u32 %s2241_s20, 4  ;;  %s2152_s29 = int_to_ptr.vmem [resolvable:$false] %s2151_s29 }
 0xc13   : > { %s2153_s19 = scalar_lea.vmem %s2152_s29, 512  ;;  %p2154_p1 = scmp.lt.s32.totalorder %s2713_s28, %s2152_s29 }
 0xc14   : > { %p2149_p11 = pnand %p2148_p8, %p2807_p3  ;;  %p2155_p0 = scmp.lt.s32.totalorder %s2153_s19, %s2147_s2 }
 0xc15   : > { %s2711_s24 = scalar_lea.hbm %s2808_s14, %s1735_s7 }
 0xc16   : > { %p2150_p13 = pneg %p2149_p11  ;;  %p2156_p6 = por %p2155_p0, %p2154_p1 }
 0xc18   : > { %p2157_p5 = pnand %p2156_p6, %p2150_p13 }
 0xcd3   : > { %v1478_v39 = vpop.f32.mrb[28].mxu0 }
 0xcd4   : > { %v1485_v40 = vadd.f32 %v1478_v39, %v2644_v18  ;;  %v1864_v41 = vpop.f32.mrb[29].mxu0 }
 0xcd5   : > { %v1481_v42 = vpop.f32.mrb[30].mxu0 }
 0xcd6   : > { %v1494_v43 = vadd.f32 %v1725_v62, %v1485_v40  ;;  %v1486_v44 = vadd.f32 %v1481_v42, %v2647_v23  ;;  %v1865_v45 = vpop.f32.mrb[31].mxu0 }
 0xcd8   : > { %1496 = vst.msk [vmem:[%s492_s12] sm:$0xff] %vm576_vm3, %v1494_v43  ;;  %v1495_v46 = vadd.f32 %v1725_v62, %v1486_v44 }
 0xcda   : > { %1497 = vst.msk [vmem:[%s492_s12 + $0x8] sm:$0xff] %vm576_vm3, %v1495_v46 }
 0xcdb   : > { %2160 = shalt.err (!%p2157_p5)
}
 0xcdc   : > { %s2161_s7 = scalar_lea.hbm %s2711_s24, 256  ;;  %s2165_s16 = scalar_lea.hbm %s2808_s14, 512 }
 0xcdd   : > { %p2162_p9 = scmp.ne.s32.totalorder %s2711_s24, %s2161_s7  ;;  %p2166_p2 = scmp.lt.u32.totalorder %s2711_s24, %s2808_s14 }
 0xcde   : > { %p2167_p4 = scmp.lt.u32.totalorder %s2165_s16, %s2161_s7  ;;  %p2169_p8 = scmp.lt.u32.totalorder %s2161_s7, %s2711_s24 }
 0xcdf   : > { %p2163_p12 = pnand %p2162_p9, %p2807_p3 }
 0xce0   : > { %p2168_p7 = por %p2167_p4, %p2166_p2 }
 0xce1   : > { %p2164_p10 = pneg %p2163_p12 }
 0xce2   : > { %p2170_p11 = por %p2169_p8, %p2168_p7 }
 0xce4   : > { %p2171_p13 = pnand %p2170_p11, %p2164_p10 }
 0xce6   : > { %2174 = shalt.err (!%p2171_p13)
}
 0xce7   : > { %1882 = dma.vmem_to_hbm [thread:$0]  (%p2807_p3), %s2713_s28, 256, %s2711_s24, %s1501_s23, %s2239_s21, %s2239_s21, %s2240_s22  }
 0xce8 PF: > { %s2809_s27 = sld [smem:[#allocation20_spill]]  ;;  %s2810_s2 = sld [smem:[#allocation18_spill]] }
 0xce9   : > { %s2811_s20 = sld [smem:[#allocation23_spill]] }
 0xcee   : > { %p1914_p1 = scmp.ge.s32.totalorder %s2809_s27, 2  ;;  %s1550_s29 = sand.u32 1, %s2810_s2  }
 0xcef   : > { %p2812_p0 = scmp.ne.s32.totalorder %s2811_s20, 0  ;;  %s1551_s19 = scalar_lea.sflag [#allocation4], %s1550_s29 }
 0xcf1   : > { %p1900_p6 = pnand %p1914_p1, %p2812_p0 }
 0xcf3   : > { %2204 = dma.done.wait (!%p1900_p6), %s1551_s19, 256  }
 0xcf4   : > { %2206 = vsyncadd (!%p1900_p6), %s1551_s19, 4294967040  ;;  %s1560_s18 = scalar_lea.sflag [#allocation12], %s1550_s29 }
 0xcf5   : > { %2208 = dma.done.wait (!%p1900_p6), %s1560_s18, 256  }
 0xcf6   : > { %2210 = vsyncadd (!%p1900_p6), %s1560_s18, 4294967040  ;;  %s2813_s28 = sld [smem:[#allocation21_spill]]  ;;  %s2814_s30 = sld [smem:[#allocation19_spill]] }
 0xcf7   : > { %s2815_s27 = sld [smem:[#allocation22_spill]]  ;;  %s2816_s25 = smov %s2217_s26 }
 0xcfc   : > { %p30_p3 = scmp.ge.s32.totalorder %s2813_s28, 4   ;;  %s2817_s26 = smov %s2814_s30 }
 0xcfe   :  { %32 = sbr.rel (!%p30_p3) target bundleno = 12 (0xc), region = 143 }
 0xd05   :  { %1565 = vsyncpa [#allocation3], 1 }
 0xd06   :  { %1567 = vsyncpa [#allocation3 + $0x1], 1 }
 0xd07   :  { %1568 = vsyncpa [#allocation6], 1 }
 0xd08   :  { %1569 = vsyncpa [#allocation9], 1 }
 0xd09   :  { %1570 = vsyncpa [#allocation4], 1 }
 0xd0a   :  { %1572 = vsyncpa [#allocation4 + $0x1], 1 }
 0xd0b   :  { %1573 = vsyncpa [#allocation12], 1 }
 0xd0c   :  { %1575 = vsyncpa [#allocation12 + $0x1], 1 }

</bundles_post_ra>
